<compile_context>
chip_gen: v7x
topology: tpu7x:2x2x1
jax: 0.10.0
libtpu: 0.0.40
codegen_flags: <defaults>
</compile_context>

<pallas_src>
import jax
import jax.numpy as jnp
import numpy as np
from jax.experimental import pallas as pl
from jax.experimental.pallas import tpu as pltpu

PADL = 8  # left zero-column offset inside the conv2 scratch (sublane aligned)


def twocon_kernel(xp_ref, w1_ref, b1_ref, w2_ref, b2_ref, o_ref, pad2_ref):
    # xp_ref  : (1, H+2, W+2, Cin)      spatially pre-padded input image (VMEM)
    # w1_ref  : (9, Cin, Cmid)          conv1 taps, tap index = ky*3 + kx
    # b1_ref  : (1, Cmid)
    # w2_ref  : (9, Cmid, Cout)
    # b2_ref  : (1, Cout)
    # o_ref   : (1, H, W, Cout)
    # pad2_ref: (H+2, W+PADL+1, Cmid)   zero-padded conv2 input scratch
    _, Hp, Wp, Cin = xp_ref.shape
    H, W = Hp - 2, Wp - 2
    Cmid = w1_ref.shape[2]
    Cout = w2_ref.shape[2]
    HW = H * W

    # ---- conv1 + ReLU : nine whole-image tap matmuls (M = H*W) ----
    # Bias folded into the accumulator init (single broadcast).
    acc1 = jnp.broadcast_to(b1_ref[...], (HW, Cmid))
    for ky in range(3):
        for kx in range(3):
            patch = xp_ref[0, ky:ky + H, kx:kx + W, :].reshape(HW, Cin)
            acc1 = acc1 + jnp.dot(patch, w1_ref[ky * 3 + kx],
                                  preferred_element_type=jnp.float32)
    h = jnp.maximum(acc1, 0.0)  # (HW, Cmid)

    # Zero the (small) conv2 padding scratch, then write the conv1 result into
    # its interior with a single block store (sublane-aligned column offset).
    pad2_ref[...] = jnp.zeros(pad2_ref.shape, pad2_ref.dtype)
    pad2_ref[1:H + 1, PADL:PADL + W, :] = h.reshape(H, W, Cmid)

    # ---- conv2 + ReLU : tap matmuls, single output store ----
    # Centre tap (ky=1, kx=1) is exactly the scratch interior == h, so feed it
    # directly from the live value (skips one scratch readback / relayout).
    acc2 = (jnp.broadcast_to(b2_ref[...], (HW, Cout))
            + jnp.dot(h, w2_ref[4], preferred_element_type=jnp.float32))
    for ky in range(3):
        for kx in range(3):
            if ky == 1 and kx == 1:
                continue
            patch = pad2_ref[ky:ky + H,
                             PADL - 1 + kx:PADL - 1 + kx + W, :].reshape(HW, Cmid)
            acc2 = acc2 + jnp.dot(patch, w2_ref[ky * 3 + kx],
                                  preferred_element_type=jnp.float32)
    o_ref[0] = jnp.maximum(acc2, 0.0).reshape(H, W, Cout).astype(o_ref.dtype)


def _two_con_impl(x_nchw, w1, b1, w2, b2):
    """TwoCon forward. x_nchw: (N, Cin, H, W); w*: (Cout, Cin, 3, 3); b*: (Cout,)."""
    N, Cin, H, W = x_nchw.shape
    Cmid = w1.shape[0]
    Cout = w2.shape[0]

    # Glue: NCHW -> NHWC (+ zero spatial pad of 1), OIHW -> (9, Cin, Cout) taps.
    x = jnp.transpose(x_nchw, (0, 2, 3, 1)).astype(jnp.float32)
    xp = jnp.pad(x, ((0, 0), (1, 1), (1, 1), (0, 0)))
    w1k = jnp.transpose(w1, (2, 3, 1, 0)).reshape(9, Cin, Cmid).astype(jnp.float32)
    w2k = jnp.transpose(w2, (2, 3, 1, 0)).reshape(9, Cmid, Cout).astype(jnp.float32)
    b1k = b1.reshape(1, Cmid).astype(jnp.float32)
    b2k = b2.reshape(1, Cout).astype(jnp.float32)

    flops = 2 * N * H * W * 9 * (Cin * Cmid + Cmid * Cout)
    bytes_accessed = 4 * (xp.size + w1k.size + w2k.size + b1k.size + b2k.size
                          + N * H * W * Cout)

    out_nhwc = pl.pallas_call(
        twocon_kernel,
        out_shape=jax.ShapeDtypeStruct((N, H, W, Cout), jnp.float32),
        grid_spec=pltpu.PrefetchScalarGridSpec(
            num_scalar_prefetch=0,
            grid=(N,),
            in_specs=[
                pl.BlockSpec((1, H + 2, W + 2, Cin), lambda n: (n, 0, 0, 0)),
                pl.BlockSpec((9, Cin, Cmid), lambda n: (0, 0, 0)),
                pl.BlockSpec((1, Cmid), lambda n: (0, 0)),
                pl.BlockSpec((9, Cmid, Cout), lambda n: (0, 0, 0)),
                pl.BlockSpec((1, Cout), lambda n: (0, 0)),
            ],
            out_specs=pl.BlockSpec((1, H, W, Cout), lambda n: (n, 0, 0, 0)),
            scratch_shapes=[
                pltpu.VMEM((H + 2, W + PADL + 1, Cmid), jnp.float32),
            ],
        ),
        compiler_params=pltpu.CompilerParams(
            dimension_semantics=("parallel",)),
        cost_estimate=pl.CostEstimate(flops=flops, transcendentals=0,
                                      bytes_accessed=bytes_accessed),
    )(xp, w1k, b1k, w2k, b2k)

    return jnp.transpose(out_nhwc, (0, 3, 1, 2))  # back to NCHW


two_con = jax.jit(_two_con_impl)


def two_con_ref(x, w1, b1, w2, b2):
    """Pure-JAX reference matching PyTorch Conv2d(3x3, padding=1) semantics."""
    def conv(x, w, b):
        y = jax.lax.conv_general_dilated(
            x, w, window_strides=(1, 1), padding=((1, 1), (1, 1)),
            dimension_numbers=("NCHW", "OIHW", "NCHW"))
        return y + b[None, :, None, None]
    h = jnp.maximum(conv(x, w1, b1), 0.0)
    return jnp.maximum(conv(h, w2, b2), 0.0)


if __name__ == "__main__":
    # Deterministic synthetic parameters (TwoCon(in_channels=4, out_channels=8)).
    N, Cin, Cout, H, W = 2, 4, 8, 16, 16
    key = jax.random.PRNGKey(0)
    k1, k2, k3, k4, k5 = jax.random.split(key, 5)
    x = jax.random.normal(k1, (N, Cin, H, W), jnp.float32)
    w1 = 0.1 * jax.random.normal(k2, (Cout, Cin, 3, 3), jnp.float32)
    b1 = 0.1 * jax.random.normal(k3, (Cout,), jnp.float32)
    w2 = 0.1 * jax.random.normal(k4, (Cout, Cout, 3, 3), jnp.float32)
    b2 = 0.1 * jax.random.normal(k5, (Cout,), jnp.float32)

    out = two_con(x, w1, b1, w2, b2)
    out = jax.block_until_ready(out)

    ref = jax.block_until_ready(two_con_ref(x, w1, b1, w2, b2))
    assert out.shape == (N, Cout, H, W), out.shape
    np.testing.assert_allclose(np.asarray(out), np.asarray(ref),
                               rtol=1e-4, atol=1e-4)
    print("KERNEL_OK")
</pallas_src>

<mosaic_0001>
module attributes {stable_mosaic.version = 11 : i64} {
  func.func @twocon_kernel(%arg0: i32, %arg1: memref<1x18x18x4xf32, #tpu.memory_space<vmem>>, %arg2: memref<9x4x8xf32, #tpu.memory_space<vmem>>, %arg3: memref<1x8xf32, #tpu.memory_space<vmem>>, %arg4: memref<9x8x8xf32, #tpu.memory_space<vmem>>, %arg5: memref<1x8xf32, #tpu.memory_space<vmem>>, %arg6: memref<1x16x16x8xf32, #tpu.memory_space<vmem>>, %arg7: memref<18x25x8xf32, #tpu.memory_space<vmem>>) attributes {dimension_semantics = [#tpu.dimension_semantics<parallel>], iteration_bounds = array<i64: 2>, scalar_prefetch = 0 : i64, scratch_operands = 1 : i64, tpu.core_type = #tpu.core_type<tc>, window_params = [{transform_indices = @transform_0, window_bounds = array<i64: 1, 18, 18, 4>}, {pipeline_mode = #tpu.pipeline_mode<synchronous>, transform_indices = @transform_1, window_bounds = array<i64: 9, 4, 8>}, {pipeline_mode = #tpu.pipeline_mode<synchronous>, transform_indices = @transform_2, window_bounds = array<i64: 1, 8>}, {pipeline_mode = #tpu.pipeline_mode<synchronous>, transform_indices = @transform_3, window_bounds = array<i64: 9, 8, 8>}, {pipeline_mode = #tpu.pipeline_mode<synchronous>, transform_indices = @transform_4, window_bounds = array<i64: 1, 8>}, {transform_indices = @transform_5, window_bounds = array<i64: 1, 16, 16, 8>}]} {
    %c0 = arith.constant 0 : index
    %c0_0 = arith.constant 0 : index
    %0 = vector.load %arg3[%c0, %c0_0] : memref<1x8xf32, #tpu.memory_space<vmem>>, vector<1x8xf32>
    %1 = vector.shape_cast %0 : vector<1x8xf32> to vector<1x8xf32>
    %2 = vector.broadcast %1 : vector<1x8xf32> to vector<256x8xf32>
    %c0_1 = arith.constant 0 : index
    %c0_2 = arith.constant 0 : index
    %c0_3 = arith.constant 0 : index
    %c0_4 = arith.constant 0 : index
    %3 = vector.load %arg1[%c0_1, %c0_2, %c0_3, %c0_4] : memref<1x18x18x4xf32, #tpu.memory_space<vmem>>, vector<1x16x16x4xf32>
    %4 = vector.shape_cast %3 : vector<1x16x16x4xf32> to vector<16x16x4xf32>
    %5 = vector.shape_cast %4 : vector<16x16x4xf32> to vector<256x4xf32>
    %c0_5 = arith.constant 0 : index
    %c0_6 = arith.constant 0 : index
    %c0_7 = arith.constant 0 : index
    %6 = vector.load %arg2[%c0_5, %c0_6, %c0_7] : memref<9x4x8xf32, #tpu.memory_space<vmem>>, vector<1x4x8xf32>
    %7 = vector.shape_cast %6 : vector<1x4x8xf32> to vector<4x8xf32>
    %cst = arith.constant dense<0.000000e+00> : vector<256x8xf32>
    %8 = tpu.matmul %5, %7, %cst {dimension_numbers = #tpu.dot_dimension_numbers<[1], [0], [0], [1], [0, 0, 1, 1], [], []>} : vector<256x4xf32>, vector<4x8xf32>, vector<256x8xf32> -> vector<256x8xf32>
    %9 = arith.addf %2, %8 : vector<256x8xf32>
    %c0_8 = arith.constant 0 : index
    %c0_9 = arith.constant 0 : index
    %c1 = arith.constant 1 : index
    %c0_10 = arith.constant 0 : index
    %10 = vector.load %arg1[%c0_8, %c0_9, %c1, %c0_10] : memref<1x18x18x4xf32, #tpu.memory_space<vmem>>, vector<1x16x16x4xf32>
    %11 = vector.shape_cast %10 : vector<1x16x16x4xf32> to vector<16x16x4xf32>
    %12 = vector.shape_cast %11 : vector<16x16x4xf32> to vector<256x4xf32>
    %c1_11 = arith.constant 1 : index
    %c0_12 = arith.constant 0 : index
    %c0_13 = arith.constant 0 : index
    %13 = vector.load %arg2[%c1_11, %c0_12, %c0_13] : memref<9x4x8xf32, #tpu.memory_space<vmem>>, vector<1x4x8xf32>
    %14 = vector.shape_cast %13 : vector<1x4x8xf32> to vector<4x8xf32>
    %cst_14 = arith.constant dense<0.000000e+00> : vector<256x8xf32>
    %15 = tpu.matmul %12, %14, %cst_14 {dimension_numbers = #tpu.dot_dimension_numbers<[1], [0], [0], [1], [0, 0, 1, 1], [], []>} : vector<256x4xf32>, vector<4x8xf32>, vector<256x8xf32> -> vector<256x8xf32>
    %16 = arith.addf %9, %15 : vector<256x8xf32>
    %c0_15 = arith.constant 0 : index
    %c0_16 = arith.constant 0 : index
    %c2 = arith.constant 2 : index
    %c0_17 = arith.constant 0 : index
    %17 = vector.load %arg1[%c0_15, %c0_16, %c2, %c0_17] : memref<1x18x18x4xf32, #tpu.memory_space<vmem>>, vector<1x16x16x4xf32>
    %18 = vector.shape_cast %17 : vector<1x16x16x4xf32> to vector<16x16x4xf32>
    %19 = vector.shape_cast %18 : vector<16x16x4xf32> to vector<256x4xf32>
    %c2_18 = arith.constant 2 : index
    %c0_19 = arith.constant 0 : index
    %c0_20 = arith.constant 0 : index
    %20 = vector.load %arg2[%c2_18, %c0_19, %c0_20] : memref<9x4x8xf32, #tpu.memory_space<vmem>>, vector<1x4x8xf32>
    %21 = vector.shape_cast %20 : vector<1x4x8xf32> to vector<4x8xf32>
    %cst_21 = arith.constant dense<0.000000e+00> : vector<256x8xf32>
    %22 = tpu.matmul %19, %21, %cst_21 {dimension_numbers = #tpu.dot_dimension_numbers<[1], [0], [0], [1], [0, 0, 1, 1], [], []>} : vector<256x4xf32>, vector<4x8xf32>, vector<256x8xf32> -> vector<256x8xf32>
    %23 = arith.addf %16, %22 : vector<256x8xf32>
    %c0_22 = arith.constant 0 : index
    %c1_23 = arith.constant 1 : index
    %c0_24 = arith.constant 0 : index
    %c0_25 = arith.constant 0 : index
    %24 = vector.load %arg1[%c0_22, %c1_23, %c0_24, %c0_25] : memref<1x18x18x4xf32, #tpu.memory_space<vmem>>, vector<1x16x16x4xf32>
    %25 = vector.shape_cast %24 : vector<1x16x16x4xf32> to vector<16x16x4xf32>
    %26 = vector.shape_cast %25 : vector<16x16x4xf32> to vector<256x4xf32>
    %c3 = arith.constant 3 : index
    %c0_26 = arith.constant 0 : index
    %c0_27 = arith.constant 0 : index
    %27 = vector.load %arg2[%c3, %c0_26, %c0_27] : memref<9x4x8xf32, #tpu.memory_space<vmem>>, vector<1x4x8xf32>
    %28 = vector.shape_cast %27 : vector<1x4x8xf32> to vector<4x8xf32>
    %cst_28 = arith.constant dense<0.000000e+00> : vector<256x8xf32>
    %29 = tpu.matmul %26, %28, %cst_28 {dimension_numbers = #tpu.dot_dimension_numbers<[1], [0], [0], [1], [0, 0, 1, 1], [], []>} : vector<256x4xf32>, vector<4x8xf32>, vector<256x8xf32> -> vector<256x8xf32>
    %30 = arith.addf %23, %29 : vector<256x8xf32>
    %c0_29 = arith.constant 0 : index
    %c1_30 = arith.constant 1 : index
    %c1_31 = arith.constant 1 : index
    %c0_32 = arith.constant 0 : index
    %31 = vector.load %arg1[%c0_29, %c1_30, %c1_31, %c0_32] : memref<1x18x18x4xf32, #tpu.memory_space<vmem>>, vector<1x16x16x4xf32>
    %32 = vector.shape_cast %31 : vector<1x16x16x4xf32> to vector<16x16x4xf32>
    %33 = vector.shape_cast %32 : vector<16x16x4xf32> to vector<256x4xf32>
    %c4 = arith.constant 4 : index
    %c0_33 = arith.constant 0 : index
    %c0_34 = arith.constant 0 : index
    %34 = vector.load %arg2[%c4, %c0_33, %c0_34] : memref<9x4x8xf32, #tpu.memory_space<vmem>>, vector<1x4x8xf32>
    %35 = vector.shape_cast %34 : vector<1x4x8xf32> to vector<4x8xf32>
    %cst_35 = arith.constant dense<0.000000e+00> : vector<256x8xf32>
    %36 = tpu.matmul %33, %35, %cst_35 {dimension_numbers = #tpu.dot_dimension_numbers<[1], [0], [0], [1], [0, 0, 1, 1], [], []>} : vector<256x4xf32>, vector<4x8xf32>, vector<256x8xf32> -> vector<256x8xf32>
    %37 = arith.addf %30, %36 : vector<256x8xf32>
    %c0_36 = arith.constant 0 : index
    %c1_37 = arith.constant 1 : index
    %c2_38 = arith.constant 2 : index
    %c0_39 = arith.constant 0 : index
    %38 = vector.load %arg1[%c0_36, %c1_37, %c2_38, %c0_39] : memref<1x18x18x4xf32, #tpu.memory_space<vmem>>, vector<1x16x16x4xf32>
    %39 = vector.shape_cast %38 : vector<1x16x16x4xf32> to vector<16x16x4xf32>
    %40 = vector.shape_cast %39 : vector<16x16x4xf32> to vector<256x4xf32>
    %c5 = arith.constant 5 : index
    %c0_40 = arith.constant 0 : index
    %c0_41 = arith.constant 0 : index
    %41 = vector.load %arg2[%c5, %c0_40, %c0_41] : memref<9x4x8xf32, #tpu.memory_space<vmem>>, vector<1x4x8xf32>
    %42 = vector.shape_cast %41 : vector<1x4x8xf32> to vector<4x8xf32>
    %cst_42 = arith.constant dense<0.000000e+00> : vector<256x8xf32>
    %43 = tpu.matmul %40, %42, %cst_42 {dimension_numbers = #tpu.dot_dimension_numbers<[1], [0], [0], [1], [0, 0, 1, 1], [], []>} : vector<256x4xf32>, vector<4x8xf32>, vector<256x8xf32> -> vector<256x8xf32>
    %44 = arith.addf %37, %43 : vector<256x8xf32>
    %c0_43 = arith.constant 0 : index
    %c2_44 = arith.constant 2 : index
    %c0_45 = arith.constant 0 : index
    %c0_46 = arith.constant 0 : index
    %45 = vector.load %arg1[%c0_43, %c2_44, %c0_45, %c0_46] : memref<1x18x18x4xf32, #tpu.memory_space<vmem>>, vector<1x16x16x4xf32>
    %46 = vector.shape_cast %45 : vector<1x16x16x4xf32> to vector<16x16x4xf32>
    %47 = vector.shape_cast %46 : vector<16x16x4xf32> to vector<256x4xf32>
    %c6 = arith.constant 6 : index
    %c0_47 = arith.constant 0 : index
    %c0_48 = arith.constant 0 : index
    %48 = vector.load %arg2[%c6, %c0_47, %c0_48] : memref<9x4x8xf32, #tpu.memory_space<vmem>>, vector<1x4x8xf32>
    %49 = vector.shape_cast %48 : vector<1x4x8xf32> to vector<4x8xf32>
    %cst_49 = arith.constant dense<0.000000e+00> : vector<256x8xf32>
    %50 = tpu.matmul %47, %49, %cst_49 {dimension_numbers = #tpu.dot_dimension_numbers<[1], [0], [0], [1], [0, 0, 1, 1], [], []>} : vector<256x4xf32>, vector<4x8xf32>, vector<256x8xf32> -> vector<256x8xf32>
    %51 = arith.addf %44, %50 : vector<256x8xf32>
    %c0_50 = arith.constant 0 : index
    %c2_51 = arith.constant 2 : index
    %c1_52 = arith.constant 1 : index
    %c0_53 = arith.constant 0 : index
    %52 = vector.load %arg1[%c0_50, %c2_51, %c1_52, %c0_53] : memref<1x18x18x4xf32, #tpu.memory_space<vmem>>, vector<1x16x16x4xf32>
    %53 = vector.shape_cast %52 : vector<1x16x16x4xf32> to vector<16x16x4xf32>
    %54 = vector.shape_cast %53 : vector<16x16x4xf32> to vector<256x4xf32>
    %c7 = arith.constant 7 : index
    %c0_54 = arith.constant 0 : index
    %c0_55 = arith.constant 0 : index
    %55 = vector.load %arg2[%c7, %c0_54, %c0_55] : memref<9x4x8xf32, #tpu.memory_space<vmem>>, vector<1x4x8xf32>
    %56 = vector.shape_cast %55 : vector<1x4x8xf32> to vector<4x8xf32>
    %cst_56 = arith.constant dense<0.000000e+00> : vector<256x8xf32>
    %57 = tpu.matmul %54, %56, %cst_56 {dimension_numbers = #tpu.dot_dimension_numbers<[1], [0], [0], [1], [0, 0, 1, 1], [], []>} : vector<256x4xf32>, vector<4x8xf32>, vector<256x8xf32> -> vector<256x8xf32>
    %58 = arith.addf %51, %57 : vector<256x8xf32>
    %c0_57 = arith.constant 0 : index
    %c2_58 = arith.constant 2 : index
    %c2_59 = arith.constant 2 : index
    %c0_60 = arith.constant 0 : index
    %59 = vector.load %arg1[%c0_57, %c2_58, %c2_59, %c0_60] : memref<1x18x18x4xf32, #tpu.memory_space<vmem>>, vector<1x16x16x4xf32>
    %60 = vector.shape_cast %59 : vector<1x16x16x4xf32> to vector<16x16x4xf32>
    %61 = vector.shape_cast %60 : vector<16x16x4xf32> to vector<256x4xf32>
    %c8 = arith.constant 8 : index
    %c0_61 = arith.constant 0 : index
    %c0_62 = arith.constant 0 : index
    %62 = vector.load %arg2[%c8, %c0_61, %c0_62] : memref<9x4x8xf32, #tpu.memory_space<vmem>>, vector<1x4x8xf32>
    %63 = vector.shape_cast %62 : vector<1x4x8xf32> to vector<4x8xf32>
    %cst_63 = arith.constant dense<0.000000e+00> : vector<256x8xf32>
    %64 = tpu.matmul %61, %63, %cst_63 {dimension_numbers = #tpu.dot_dimension_numbers<[1], [0], [0], [1], [0, 0, 1, 1], [], []>} : vector<256x4xf32>, vector<4x8xf32>, vector<256x8xf32> -> vector<256x8xf32>
    %65 = arith.addf %58, %64 : vector<256x8xf32>
    %cst_64 = arith.constant 0.000000e+00 : f32
    %66 = vector.broadcast %cst_64 : f32 to vector<256x8xf32>
    %67 = arith.maximumf %65, %66 : vector<256x8xf32>
    %cst_65 = arith.constant 0.000000e+00 : f32
    %68 = vector.broadcast %cst_65 : f32 to vector<18x25x8xf32>
    %c0_66 = arith.constant 0 : index
    %c0_67 = arith.constant 0 : index
    %c0_68 = arith.constant 0 : index
    %69 = vector.load %arg7[%c0_66, %c0_67, %c0_68] : memref<18x25x8xf32, #tpu.memory_space<vmem>>, vector<18x25x8xf32>
    tpu.vector_store %arg7[%c0_66, %c0_67, %c0_68], %68 {strides = array<i32>} : memref<18x25x8xf32, #tpu.memory_space<vmem>>, vector<18x25x8xf32>,
    %70 = vector.shape_cast %67 : vector<256x8xf32> to vector<16x16x8xf32>
    %c1_69 = arith.constant 1 : index
    %c8_70 = arith.constant 8 : index
    %c0_71 = arith.constant 0 : index
    %71 = vector.load %arg7[%c1_69, %c8_70, %c0_71] : memref<18x25x8xf32, #tpu.memory_space<vmem>>, vector<16x16x8xf32>
    tpu.vector_store %arg7[%c1_69, %c8_70, %c0_71], %70 {strides = array<i32>} : memref<18x25x8xf32, #tpu.memory_space<vmem>>, vector<16x16x8xf32>,
    %c0_72 = arith.constant 0 : index
    %c0_73 = arith.constant 0 : index
    %72 = vector.load %arg5[%c0_72, %c0_73] : memref<1x8xf32, #tpu.memory_space<vmem>>, vector<1x8xf32>
    %73 = vector.shape_cast %72 : vector<1x8xf32> to vector<1x8xf32>
    %74 = vector.broadcast %73 : vector<1x8xf32> to vector<256x8xf32>
    %c4_74 = arith.constant 4 : index
    %c0_75 = arith.constant 0 : index
    %c0_76 = arith.constant 0 : index
    %75 = vector.load %arg4[%c4_74, %c0_75, %c0_76] : memref<9x8x8xf32, #tpu.memory_space<vmem>>, vector<1x8x8xf32>
    %76 = vector.shape_cast %75 : vector<1x8x8xf32> to vector<8x8xf32>
    %cst_77 = arith.constant dense<0.000000e+00> : vector<256x8xf32>
    %77 = tpu.matmul %67, %76, %cst_77 {dimension_numbers = #tpu.dot_dimension_numbers<[1], [0], [0], [1], [0, 0, 1, 1], [], []>} : vector<256x8xf32>, vector<8x8xf32>, vector<256x8xf32> -> vector<256x8xf32>
    %78 = arith.addf %74, %77 : vector<256x8xf32>
    %c0_78 = arith.constant 0 : index
    %c7_79 = arith.constant 7 : index
    %c0_80 = arith.constant 0 : index
    %79 = vector.load %arg7[%c0_78, %c7_79, %c0_80] : memref<18x25x8xf32, #tpu.memory_space<vmem>>, vector<16x16x8xf32>
    %80 = vector.shape_cast %79 : vector<16x16x8xf32> to vector<256x8xf32>
    %c0_81 = arith.constant 0 : index
    %c0_82 = arith.constant 0 : index
    %c0_83 = arith.constant 0 : index
    %81 = vector.load %arg4[%c0_81, %c0_82, %c0_83] : memref<9x8x8xf32, #tpu.memory_space<vmem>>, vector<1x8x8xf32>
    %82 = vector.shape_cast %81 : vector<1x8x8xf32> to vector<8x8xf32>
    %cst_84 = arith.constant dense<0.000000e+00> : vector<256x8xf32>
    %83 = tpu.matmul %80, %82, %cst_84 {dimension_numbers = #tpu.dot_dimension_numbers<[1], [0], [0], [1], [0, 0, 1, 1], [], []>} : vector<256x8xf32>, vector<8x8xf32>, vector<256x8xf32> -> vector<256x8xf32>
    %84 = arith.addf %78, %83 : vector<256x8xf32>
    %c0_85 = arith.constant 0 : index
    %c8_86 = arith.constant 8 : index
    %c0_87 = arith.constant 0 : index
    %85 = vector.load %arg7[%c0_85, %c8_86, %c0_87] : memref<18x25x8xf32, #tpu.memory_space<vmem>>, vector<16x16x8xf32>
    %86 = vector.shape_cast %85 : vector<16x16x8xf32> to vector<256x8xf32>
    %c1_88 = arith.constant 1 : index
    %c0_89 = arith.constant 0 : index
    %c0_90 = arith.constant 0 : index
    %87 = vector.load %arg4[%c1_88, %c0_89, %c0_90] : memref<9x8x8xf32, #tpu.memory_space<vmem>>, vector<1x8x8xf32>
    %88 = vector.shape_cast %87 : vector<1x8x8xf32> to vector<8x8xf32>
    %cst_91 = arith.constant dense<0.000000e+00> : vector<256x8xf32>
    %89 = tpu.matmul %86, %88, %cst_91 {dimension_numbers = #tpu.dot_dimension_numbers<[1], [0], [0], [1], [0, 0, 1, 1], [], []>} : vector<256x8xf32>, vector<8x8xf32>, vector<256x8xf32> -> vector<256x8xf32>
    %90 = arith.addf %84, %89 : vector<256x8xf32>
    %c0_92 = arith.constant 0 : index
    %c9 = arith.constant 9 : index
    %c0_93 = arith.constant 0 : index
    %91 = vector.load %arg7[%c0_92, %c9, %c0_93] : memref<18x25x8xf32, #tpu.memory_space<vmem>>, vector<16x16x8xf32>
    %92 = vector.shape_cast %91 : vector<16x16x8xf32> to vector<256x8xf32>
    %c2_94 = arith.constant 2 : index
    %c0_95 = arith.constant 0 : index
    %c0_96 = arith.constant 0 : index
    %93 = vector.load %arg4[%c2_94, %c0_95, %c0_96] : memref<9x8x8xf32, #tpu.memory_space<vmem>>, vector<1x8x8xf32>
    %94 = vector.shape_cast %93 : vector<1x8x8xf32> to vector<8x8xf32>
    %cst_97 = arith.constant dense<0.000000e+00> : vector<256x8xf32>
    %95 = tpu.matmul %92, %94, %cst_97 {dimension_numbers = #tpu.dot_dimension_numbers<[1], [0], [0], [1], [0, 0, 1, 1], [], []>} : vector<256x8xf32>, vector<8x8xf32>, vector<256x8xf32> -> vector<256x8xf32>
    %96 = arith.addf %90, %95 : vector<256x8xf32>
    %c1_98 = arith.constant 1 : index
    %c7_99 = arith.constant 7 : index
    %c0_100 = arith.constant 0 : index
    %97 = vector.load %arg7[%c1_98, %c7_99, %c0_100] : memref<18x25x8xf32, #tpu.memory_space<vmem>>, vector<16x16x8xf32>
    %98 = vector.shape_cast %97 : vector<16x16x8xf32> to vector<256x8xf32>
    %c3_101 = arith.constant 3 : index
    %c0_102 = arith.constant 0 : index
    %c0_103 = arith.constant 0 : index
    %99 = vector.load %arg4[%c3_101, %c0_102, %c0_103] : memref<9x8x8xf32, #tpu.memory_space<vmem>>, vector<1x8x8xf32>
    %100 = vector.shape_cast %99 : vector<1x8x8xf32> to vector<8x8xf32>
    %cst_104 = arith.constant dense<0.000000e+00> : vector<256x8xf32>
    %101 = tpu.matmul %98, %100, %cst_104 {dimension_numbers = #tpu.dot_dimension_numbers<[1], [0], [0], [1], [0, 0, 1, 1], [], []>} : vector<256x8xf32>, vector<8x8xf32>, vector<256x8xf32> -> vector<256x8xf32>
    %102 = arith.addf %96, %101 : vector<256x8xf32>
    %c1_105 = arith.constant 1 : index
    %c9_106 = arith.constant 9 : index
    %c0_107 = arith.constant 0 : index
    %103 = vector.load %arg7[%c1_105, %c9_106, %c0_107] : memref<18x25x8xf32, #tpu.memory_space<vmem>>, vector<16x16x8xf32>
    %104 = vector.shape_cast %103 : vector<16x16x8xf32> to vector<256x8xf32>
    %c5_108 = arith.constant 5 : index
    %c0_109 = arith.constant 0 : index
    %c0_110 = arith.constant 0 : index
    %105 = vector.load %arg4[%c5_108, %c0_109, %c0_110] : memref<9x8x8xf32, #tpu.memory_space<vmem>>, vector<1x8x8xf32>
    %106 = vector.shape_cast %105 : vector<1x8x8xf32> to vector<8x8xf32>
    %cst_111 = arith.constant dense<0.000000e+00> : vector<256x8xf32>
    %107 = tpu.matmul %104, %106, %cst_111 {dimension_numbers = #tpu.dot_dimension_numbers<[1], [0], [0], [1], [0, 0, 1, 1], [], []>} : vector<256x8xf32>, vector<8x8xf32>, vector<256x8xf32> -> vector<256x8xf32>
    %108 = arith.addf %102, %107 : vector<256x8xf32>
    %c2_112 = arith.constant 2 : index
    %c7_113 = arith.constant 7 : index
    %c0_114 = arith.constant 0 : index
    %109 = vector.load %arg7[%c2_112, %c7_113, %c0_114] : memref<18x25x8xf32, #tpu.memory_space<vmem>>, vector<16x16x8xf32>
    %110 = vector.shape_cast %109 : vector<16x16x8xf32> to vector<256x8xf32>
    %c6_115 = arith.constant 6 : index
    %c0_116 = arith.constant 0 : index
    %c0_117 = arith.constant 0 : index
    %111 = vector.load %arg4[%c6_115, %c0_116, %c0_117] : memref<9x8x8xf32, #tpu.memory_space<vmem>>, vector<1x8x8xf32>
    %112 = vector.shape_cast %111 : vector<1x8x8xf32> to vector<8x8xf32>
    %cst_118 = arith.constant dense<0.000000e+00> : vector<256x8xf32>
    %113 = tpu.matmul %110, %112, %cst_118 {dimension_numbers = #tpu.dot_dimension_numbers<[1], [0], [0], [1], [0, 0, 1, 1], [], []>} : vector<256x8xf32>, vector<8x8xf32>, vector<256x8xf32> -> vector<256x8xf32>
    %114 = arith.addf %108, %113 : vector<256x8xf32>
    %c2_119 = arith.constant 2 : index
    %c8_120 = arith.constant 8 : index
    %c0_121 = arith.constant 0 : index
    %115 = vector.load %arg7[%c2_119, %c8_120, %c0_121] : memref<18x25x8xf32, #tpu.memory_space<vmem>>, vector<16x16x8xf32>
    %116 = vector.shape_cast %115 : vector<16x16x8xf32> to vector<256x8xf32>
    %c7_122 = arith.constant 7 : index
    %c0_123 = arith.constant 0 : index
    %c0_124 = arith.constant 0 : index
    %117 = vector.load %arg4[%c7_122, %c0_123, %c0_124] : memref<9x8x8xf32, #tpu.memory_space<vmem>>, vector<1x8x8xf32>
    %118 = vector.shape_cast %117 : vector<1x8x8xf32> to vector<8x8xf32>
    %cst_125 = arith.constant dense<0.000000e+00> : vector<256x8xf32>
    %119 = tpu.matmul %116, %118, %cst_125 {dimension_numbers = #tpu.dot_dimension_numbers<[1], [0], [0], [1], [0, 0, 1, 1], [], []>} : vector<256x8xf32>, vector<8x8xf32>, vector<256x8xf32> -> vector<256x8xf32>
    %120 = arith.addf %114, %119 : vector<256x8xf32>
    %c2_126 = arith.constant 2 : index
    %c9_127 = arith.constant 9 : index
    %c0_128 = arith.constant 0 : index
    %121 = vector.load %arg7[%c2_126, %c9_127, %c0_128] : memref<18x25x8xf32, #tpu.memory_space<vmem>>, vector<16x16x8xf32>
    %122 = vector.shape_cast %121 : vector<16x16x8xf32> to vector<256x8xf32>
    %c8_129 = arith.constant 8 : index
    %c0_130 = arith.constant 0 : index
    %c0_131 = arith.constant 0 : index
    %123 = vector.load %arg4[%c8_129, %c0_130, %c0_131] : memref<9x8x8xf32, #tpu.memory_space<vmem>>, vector<1x8x8xf32>
    %124 = vector.shape_cast %123 : vector<1x8x8xf32> to vector<8x8xf32>
    %cst_132 = arith.constant dense<0.000000e+00> : vector<256x8xf32>
    %125 = tpu.matmul %122, %124, %cst_132 {dimension_numbers = #tpu.dot_dimension_numbers<[1], [0], [0], [1], [0, 0, 1, 1], [], []>} : vector<256x8xf32>, vector<8x8xf32>, vector<256x8xf32> -> vector<256x8xf32>
    %126 = arith.addf %120, %125 : vector<256x8xf32>
    %cst_133 = arith.constant 0.000000e+00 : f32
    %127 = vector.broadcast %cst_133 : f32 to vector<256x8xf32>
    %128 = arith.maximumf %126, %127 : vector<256x8xf32>
    %129 = vector.shape_cast %128 : vector<256x8xf32> to vector<16x16x8xf32>
    %c0_134 = arith.constant 0 : index
    %c0_135 = arith.constant 0 : index
    %c0_136 = arith.constant 0 : index
    %c0_137 = arith.constant 0 : index
    %130 = vector.load %arg6[%c0_134, %c0_135, %c0_136, %c0_137] : memref<1x16x16x8xf32, #tpu.memory_space<vmem>>, vector<1x16x16x8xf32>
    %131 = vector.shape_cast %130 : vector<1x16x16x8xf32> to vector<16x16x8xf32>
    %132 = vector.shape_cast %129 : vector<16x16x8xf32> to vector<1x16x16x8xf32>
    tpu.vector_store %arg6[%c0_134, %c0_135, %c0_136, %c0_137], %132 {strides = array<i32>} : memref<1x16x16x8xf32, #tpu.memory_space<vmem>>, vector<1x16x16x8xf32>,
    return
  }
  func.func @transform_0(%arg0: i32) -> (i32, i32, i32, i32) {
    %c0_i32 = arith.constant 0 : i32
    %c0_i32_0 = arith.constant 0 : i32
    %c0_i32_1 = arith.constant 0 : i32
    %c0_i32_2 = arith.constant 0 : i32
    return %arg0, %c0_i32, %c0_i32_0, %c0_i32_1 : i32, i32, i32, i32
  }
  func.func @transform_1(%arg0: i32) -> (i32, i32, i32) {
    %c0_i32 = arith.constant 0 : i32
    %c0_i32_0 = arith.constant 0 : i32
    %c0_i32_1 = arith.constant 0 : i32
    %c0_i32_2 = arith.constant 0 : i32
    return %c0_i32, %c0_i32_0, %c0_i32_1 : i32, i32, i32
  }
  func.func @transform_2(%arg0: i32) -> (i32, i32) {
    %c0_i32 = arith.constant 0 : i32
    %c0_i32_0 = arith.constant 0 : i32
    %c0_i32_1 = arith.constant 0 : i32
    return %c0_i32, %c0_i32_0 : i32, i32
  }
  func.func @transform_3(%arg0: i32) -> (i32, i32, i32) {
    %c0_i32 = arith.constant 0 : i32
    %c0_i32_0 = arith.constant 0 : i32
    %c0_i32_1 = arith.constant 0 : i32
    %c0_i32_2 = arith.constant 0 : i32
    return %c0_i32, %c0_i32_0, %c0_i32_1 : i32, i32, i32
  }
  func.func @transform_4(%arg0: i32) -> (i32, i32) {
    %c0_i32 = arith.constant 0 : i32
    %c0_i32_0 = arith.constant 0 : i32
    %c0_i32_1 = arith.constant 0 : i32
    return %c0_i32, %c0_i32_0 : i32, i32
  }
  func.func @transform_5(%arg0: i32) -> (i32, i32, i32, i32) {
    %c0_i32 = arith.constant 0 : i32
    %c0_i32_0 = arith.constant 0 : i32
    %c0_i32_1 = arith.constant 0 : i32
    %c0_i32_2 = arith.constant 0 : i32
    return %arg0, %c0_i32, %c0_i32_0, %c0_i32_1 : i32, i32, i32, i32
  }
}

</mosaic_0001>

<bundles_post_ra>
// kernel: _two_con_impl.1
= control target key start
LH: loop header
LB: loop body
LE: loop exit
PB: predicated region body
PF: predicated region fallthrough
CT: control target
= control target key end

     0   :  { %s10386_s18 = smov 0   ;;  %s12401_s0 = inlined_call_operand.vmem [shape: f32[2,18,18,4], index: 0, kind: input, shape index: {}]   ;;  %s12402_s1 = inlined_call_operand.vmem [shape: f32[9,4,8], index: 1, kind: input, shape index: {}]   ;;  %s12403_s2 = inlined_call_operand.vmem [shape: f32[1,8], index: 2, kind: input, shape index: {}]   ;;  %s12404_s3 = inlined_call_operand.vmem [shape: f32[9,8,8], index: 3, kind: input, shape index: {}]   ;;  %s12405_s4 = inlined_call_operand.vmem [shape: f32[1,8], index: 4, kind: input, shape index: {}]   ;;  %s12406_s5 = inlined_call_operand.vmem [shape: f32[2,16,16,8], index: 5, kind: output, shape index: {}]  }
   0x1 LB: > { %s7461_s19 = sadd.s32 4294967295, %s10353_s18   ;;  %p7465_p0 = scmp.ge.s32.totalorder %s10353_s18, 1  ;;  %s10353_s18 = sphi %s10386_s18, %s15_s18  }
   0x2   : > { %p187_p1 = scmp.lt.s32.totalorder %s10353_s18, 3 }
   0x4   : > { %p188_p2 = pnand %p7465_p0, %p187_p1 }
   0x6   : > { %191 = sbr.rel (%p188_p2) target bundleno = 1541 (0x605), region = 40 }
   0xd   : > { %v264_v0 = vld [vmem:[%s12402_s1] sm:$0xf]  ;;  %vm362_vm0 = vcmask 1043456   ;;  %p215_p3 = scmp.lt.s32.totalorder %s7461_s19, 1  ;;  %v7503_v1 = vld [vmem:[%s12402_s1 + $0x4] sm:$0xf] }
   0xe   : > { %8861 = vmatprep.subr.msk.mxu0 %vm362_vm0, %v264_v0  ;;  %vm265_vm1 = vcmask 31744   ;;  %v10420_v5 = vld [vmem:[%s12402_s1 + $0x8] sm:$0xf]  ;;  %v10582_v38 = vld [vmem:[%s12402_s1 + $0xc] sm:$0xf]  ;;  %vm3777_vm2 = vcmask 64512  }
   0xf   : > { %8862 = vmatpush3.msk.msra.mxu0 %vm362_vm0, %v264_v0  ;;  %s12640_s19 = smov (!%p215_p3, %s7461_s19), 1  ;;  %vm3781_vm3 = vcmask 57344  }
  0x10   : > { %8911 = vmatprep.subr.msk.mxu0 %vm362_vm0, %v7503_v1  ;;  %s10337_s24 = smul.u32 432, %s12640_s19  ;;  %s8266_s16 = sshll.u32 %s12640_s19, 8 }
  0x11   : > { %s12301_s21 = scalar_lea.vmem %s12406_s5, %s8266_s16 }
  0x12   : > { %s10409_s27 = scalar_lea.vmem %s12401_s0, %s10337_s24 }
  0x13   : > { %v232_v2 = vld [vmem:[%s10409_s27] sm:$0xff]  ;;  %v233_v3 = vld [vmem:[%s10409_s27 + $0x8] sm:$0xff]  ;;  %v10414_v4 = vld [vmem:[%s10409_s27 + $0x18] sm:$0xff] }
  0x14   : > { %8863 = vmatprep.mubr.msk.f32.mxu0 %vm265_vm1, %v232_v2  ;;  %v10427_v6 = vld [vmem:[%s10409_s27 + $0x20] sm:$0xff]  ;;  %v10430_v7 = vld [vmem:[%s10409_s27 + $0x30] sm:$0xff]  ;;  %v10439_v8 = vld [vmem:[%s10409_s27 + $0x38] sm:$0xff] }
  0x15   : > { %8864 = vmatmul.mubr.msk.f32.vlgmr.msra.gmra.mrb[0].mxu0 %vm265_vm1, %v233_v3  ;;  %v10442_v9 = vld [vmem:[%s10409_s27 + $0x48] sm:$0xff]  ;;  %v10449_v10 = vld [vmem:[%s10409_s27 + $0x50] sm:$0xff]  ;;  %v10452_v11 = vld [vmem:[%s10409_s27 + $0x60] sm:$0xff] }
  0x16   : > { %8912 = vmatpush3.msk.msra.mxu0 %vm362_vm0, %v7503_v1  ;;  %8866 = vmatprep.mubr.msk.f32.mxu0 %vm265_vm1, %v10414_v4  ;;  %v10459_v12 = vld [vmem:[%s10409_s27 + $0x68] sm:$0xff]  ;;  %v10462_v13 = vld [vmem:[%s10409_s27 + $0x78] sm:$0xff]  ;;  %v10469_v14 = vld [vmem:[%s10409_s27 + $0x80] sm:$0xff] }
  0x17   : > { %8961 = vmatprep.subr.msk.mxu0 %vm362_vm0, %v10420_v5  ;;  %v10472_v15 = vld [vmem:[%s10409_s27 + $0x90] sm:$0xff]  ;;  %v10479_v16 = vld [vmem:[%s10409_s27 + $0x98] sm:$0xff]  ;;  %v10482_v17 = vld [vmem:[%s10409_s27 + $0xa8] sm:$0xff] }
  0x18   : > { %v10489_v18 = vld [vmem:[%s10409_s27 + $0xb0] sm:$0xff]  ;;  %v10492_v19 = vld [vmem:[%s10409_s27 + $0xc0] sm:$0xff]  ;;  %v10499_v20 = vld [vmem:[%s10409_s27 + $0xc8] sm:$0xff] }
  0x19   : > { %8867 = vmatmul.mubr.msk.f32.gmra.mrb[2].mxu0 %vm265_vm1, %v10427_v6  ;;  %v10502_v21 = vld [vmem:[%s10409_s27 + $0xd8] sm:$0xff]  ;;  %v10509_v22 = vld [vmem:[%s10409_s27 + $0xe0] sm:$0xff]  ;;  %v10512_v23 = vld [vmem:[%s10409_s27 + $0xf0] sm:$0xff] }
  0x1a   : > { %8869 = vmatprep.mubr.msk.f32.mxu0 %vm265_vm1, %v10430_v7  ;;  %v10519_v24 = vld [vmem:[%s10409_s27 + $0xf8] sm:$0xff]  ;;  %v10522_v25 = vld [vmem:[%s10409_s27 + $0x108] sm:$0xff]  ;;  %v10529_v26 = vld [vmem:[%s10409_s27 + $0x110] sm:$0xff] }
  0x1b   : > { %v10532_v27 = vld [vmem:[%s10409_s27 + $0x120] sm:$0xff]  ;;  %v10539_v28 = vld [vmem:[%s10409_s27 + $0x128] sm:$0xff]  ;;  %v10542_v29 = vld [vmem:[%s10409_s27 + $0x138] sm:$0xff] }
  0x1c   : > { %v10549_v30 = vld [vmem:[%s10409_s27 + $0x140] sm:$0xff]  ;;  %v10552_v31 = vld [vmem:[%s10409_s27 + $0x150] sm:$0xff]  ;;  %v10559_v32 = vld [vmem:[%s10409_s27 + $0x158] sm:$0xff] }
  0x1d   : > { %8870 = vmatmul.mubr.msk.f32.gmra.mrb[4].mxu0 %vm265_vm1, %v10439_v8  ;;  %v10562_v33 = vld [vmem:[%s10409_s27 + $0x168] sm:$0xff]  ;;  %v10569_v34 = vld [vmem:[%s10409_s27 + $0x170] sm:$0xff]  ;;  %v10577_v37 = vld [vmem:[%s10409_s27 + $0x19] sm:$0xff] }
  0x1e   : > { %8872 = vmatprep.mubr.msk.f32.mxu0 %vm265_vm1, %v10442_v9  ;;  %v623_v35 = vld [vmem:[%s10409_s27 + $0x1] sm:$0xff]  ;;  %v624_v36 = vld [vmem:[%s10409_s27 + $0x9] sm:$0xff]  ;;  %v10593_v40 = vld [vmem:[%s10409_s27 + $0x31] sm:$0xff] }
  0x1f   : > { %v10590_v39 = vld [vmem:[%s10409_s27 + $0x21] sm:$0xff]  ;;  %v10602_v41 = vld [vmem:[%s10409_s27 + $0x39] sm:$0xff]  ;;  %v10605_v42 = vld [vmem:[%s10409_s27 + $0x49] sm:$0xff] }
  0x20   : > { %v10612_v43 = vld [vmem:[%s10409_s27 + $0x51] sm:$0xff]  ;;  %v10615_v44 = vld [vmem:[%s10409_s27 + $0x61] sm:$0xff]  ;;  %v10622_v45 = vld [vmem:[%s10409_s27 + $0x69] sm:$0xff] }
  0x21   : > { %8873 = vmatmul.mubr.msk.f32.gmra.mrb[6].mxu0 %vm265_vm1, %v10449_v10  ;;  %v10625_v46 = vld [vmem:[%s10409_s27 + $0x79] sm:$0xff]  ;;  %v10632_v47 = vld [vmem:[%s10409_s27 + $0x81] sm:$0xff]  ;;  %v10635_v48 = vld [vmem:[%s10409_s27 + $0x91] sm:$0xff] }
  0x22   : > { %8875 = vmatprep.mubr.msk.f32.mxu0 %vm265_vm1, %v10452_v11  ;;  %v10642_v49 = vld [vmem:[%s10409_s27 + $0x99] sm:$0xff]  ;;  %v10645_v50 = vld [vmem:[%s10409_s27 + $0xa9] sm:$0xff]  ;;  %v10652_v51 = vld [vmem:[%s10409_s27 + $0xb1] sm:$0xff] }
  0x23   : > { %v10655_v52 = vld [vmem:[%s10409_s27 + $0xc1] sm:$0xff]  ;;  %v10662_v53 = vld [vmem:[%s10409_s27 + $0xc9] sm:$0xff]  ;;  %v10665_v54 = vld [vmem:[%s10409_s27 + $0xd9] sm:$0xff] }
  0x24   : > { %v10672_v55 = vld [vmem:[%s10409_s27 + $0xe1] sm:$0xff]  ;;  %v10675_v56 = vld [vmem:[%s10409_s27 + $0xf1] sm:$0xff]  ;;  %v10682_v57 = vld [vmem:[%s10409_s27 + $0xf9] sm:$0xff] }
  0x25   : > { %8876 = vmatmul.mubr.msk.f32.gmra.mrb[8].mxu0 %vm265_vm1, %v10459_v12  ;;  %v10685_v58 = vld [vmem:[%s10409_s27 + $0x109] sm:$0xff]  ;;  %v10692_v59 = vld [vmem:[%s10409_s27 + $0x111] sm:$0xff]  ;;  %v10695_v60 = vld [vmem:[%s10409_s27 + $0x121] sm:$0xff] }
  0x26   : > { %8878 = vmatprep.mubr.msk.f32.mxu0 %vm265_vm1, %v10462_v13  ;;  %12495 = vst [vmem:[#allocation3_spill] sm:$0xff] %v10695_v60  ;;  %v10702_v61 = vld [vmem:[%s10409_s27 + $0x129] sm:$0xff]  ;;  %v10705_v62 = vld [vmem:[%s10409_s27 + $0x139] sm:$0xff]  ;;  %v10712_v63 = vld [vmem:[%s10409_s27 + $0x141] sm:$0xff] }
  0x27   : > { %12496 = vst [vmem:[#allocation4_spill] sm:$0xff] %v10702_v61  ;;  %12497 = vst [vmem:[#allocation5_spill] sm:$0xff] %v10705_v62  ;;  %v10715_v0 = vld [vmem:[%s10409_s27 + $0x151] sm:$0xff]  ;;  %v10722_v1 = vld [vmem:[%s10409_s27 + $0x159] sm:$0xff] }
  0x28   : > { %12498 = vst [vmem:[#allocation6_spill] sm:$0xff] %v10712_v63  ;;  %12499 = vst [vmem:[#allocation7_spill] sm:$0xff] %v10715_v0  ;;  %v10725_v2 = vld [vmem:[%s10409_s27 + $0x169] sm:$0xff]  ;;  %v10732_v3 = vld [vmem:[%s10409_s27 + $0x171] sm:$0xff] }
  0x29   : > { %8879 = vmatmul.mubr.msk.f32.gmra.mrb[10].mxu0 %vm265_vm1, %v10469_v14  ;;  %12500 = vst [vmem:[#allocation8_spill] sm:$0xff] %v10722_v1  ;;  %12501 = vst [vmem:[#allocation9_spill] sm:$0xff] %v10725_v2 }
  0x2a   : > { %8881 = vmatprep.mubr.msk.f32.mxu0 %vm265_vm1, %v10472_v15  ;;  %12502 = vst [vmem:[#allocation10_spill] sm:$0xff] %v10732_v3 }
  0x2d   : > { %8882 = vmatmul.mubr.msk.f32.gmra.mrb[12].mxu0 %vm265_vm1, %v10479_v16 }
  0x2e   : > { %8884 = vmatprep.mubr.msk.f32.mxu0 %vm265_vm1, %v10482_v17 }
  0x31   : > { %8885 = vmatmul.mubr.msk.f32.gmra.mrb[14].mxu0 %vm265_vm1, %v10489_v18 }
  0x32   : > { %8887 = vmatprep.mubr.msk.f32.mxu0 %vm265_vm1, %v10492_v19 }
  0x35   : > { %8888 = vmatmul.mubr.msk.f32.gmra.mrb[16].mxu0 %vm265_vm1, %v10499_v20 }
  0x36   : > { %8890 = vmatprep.mubr.msk.f32.mxu0 %vm265_vm1, %v10502_v21 }
  0x39   : > { %8891 = vmatmul.mubr.msk.f32.gmra.mrb[18].mxu0 %vm265_vm1, %v10509_v22 }
  0x3a   : > { %8893 = vmatprep.mubr.msk.f32.mxu0 %vm265_vm1, %v10512_v23 }
  0x3d   : > { %8894 = vmatmul.mubr.msk.f32.gmra.mrb[20].mxu0 %vm265_vm1, %v10519_v24 }
  0x3e   : > { %8896 = vmatprep.mubr.msk.f32.mxu0 %vm265_vm1, %v10522_v25 }
  0x41   : > { %8897 = vmatmul.mubr.msk.f32.gmra.mrb[22].mxu0 %vm265_vm1, %v10529_v26 }
  0x42   : > { %8899 = vmatprep.mubr.msk.f32.mxu0 %vm265_vm1, %v10532_v27 }
  0x45   : > { %8900 = vmatmul.mubr.msk.f32.gmra.mrb[24].mxu0 %vm265_vm1, %v10539_v28 }
  0x46   : > { %8902 = vmatprep.mubr.msk.f32.mxu0 %vm265_vm1, %v10542_v29 }
  0x49   : > { %8903 = vmatmul.mubr.msk.f32.gmra.mrb[26].mxu0 %vm265_vm1, %v10549_v30 }
  0x4a   : > { %8905 = vmatprep.mubr.msk.f32.mxu0 %vm265_vm1, %v10552_v31 }
  0x4d   : > { %8906 = vmatmul.mubr.msk.f32.gmra.mrb[28].mxu0 %vm265_vm1, %v10559_v32 }
  0x4e   : > { %8908 = vmatprep.mubr.msk.f32.mxu0 %vm265_vm1, %v10562_v33 }
  0x51   : > { %8909 = vmatmul.mubr.msk.f32.gmra.mrb[30].mxu0 %vm265_vm1, %v10569_v34 }
  0x52   : > { %8913 = vmatprep.mubr.msk.f32.mxu0 %vm265_vm1, %v623_v35  ;;  %v1014_v35 = vld [vmem:[%s10409_s27 + $0xa] sm:$0xff] }
  0x55   : > { %8914 = vmatmul.mubr.msk.f32.vlgmr.msra.gmra.mrb[0].mxu0 %vm265_vm1, %v624_v36  ;;  %v10740_v36 = vld [vmem:[%s10409_s27 + $0x1a] sm:$0xff] }
  0x56   : > { %8962 = vmatpush3.msk.msra.mxu0 %vm362_vm0, %v10420_v5  ;;  %8916 = vmatprep.mubr.msk.f32.mxu0 %vm265_vm1, %v10577_v37  ;;  %v1013_v5 = vld [vmem:[%s10409_s27 + $0x2] sm:$0xff]  ;;  %12503 = vst [vmem:[#allocation11_spill] sm:$0xff] %v10740_v36 }
  0x57   : > { %9011 = vmatprep.subr.msk.mxu0 %vm362_vm0, %v10582_v38 }
  0x59   : > { %8917 = vmatmul.mubr.msk.f32.gmra.mrb[2].mxu0 %vm265_vm1, %v10590_v39 }
  0x5a   : > { %8919 = vmatprep.mubr.msk.f32.mxu0 %vm265_vm1, %v10593_v40 }
  0x5d   : > { %8920 = vmatmul.mubr.msk.f32.gmra.mrb[4].mxu0 %vm265_vm1, %v10602_v41 }
  0x5e   : > { %8922 = vmatprep.mubr.msk.f32.mxu0 %vm265_vm1, %v10605_v42 }
  0x61   : > { %8923 = vmatmul.mubr.msk.f32.gmra.mrb[6].mxu0 %vm265_vm1, %v10612_v43 }
  0x62   : > { %8925 = vmatprep.mubr.msk.f32.mxu0 %vm265_vm1, %v10615_v44 }
  0x65   : > { %8926 = vmatmul.mubr.msk.f32.gmra.mrb[8].mxu0 %vm265_vm1, %v10622_v45 }
  0x66   : > { %8928 = vmatprep.mubr.msk.f32.mxu0 %vm265_vm1, %v10625_v46 }
  0x69   : > { %8929 = vmatmul.mubr.msk.f32.gmra.mrb[10].mxu0 %vm265_vm1, %v10632_v47 }
  0x6a   : > { %8931 = vmatprep.mubr.msk.f32.mxu0 %vm265_vm1, %v10635_v48 }
  0x6d   : > { %8932 = vmatmul.mubr.msk.f32.gmra.mrb[12].mxu0 %vm265_vm1, %v10642_v49 }
  0x6e   : > { %8934 = vmatprep.mubr.msk.f32.mxu0 %vm265_vm1, %v10645_v50 }
  0x71   : > { %8935 = vmatmul.mubr.msk.f32.gmra.mrb[14].mxu0 %vm265_vm1, %v10652_v51 }
  0x72   : > { %8937 = vmatprep.mubr.msk.f32.mxu0 %vm265_vm1, %v10655_v52 }
  0x75   : > { %8938 = vmatmul.mubr.msk.f32.gmra.mrb[16].mxu0 %vm265_vm1, %v10662_v53 }
  0x76   : > { %8940 = vmatprep.mubr.msk.f32.mxu0 %vm265_vm1, %v10665_v54 }
  0x79   : > { %8941 = vmatmul.mubr.msk.f32.gmra.mrb[18].mxu0 %vm265_vm1, %v10672_v55 }
  0x7a   : > { %8943 = vmatprep.mubr.msk.f32.mxu0 %vm265_vm1, %v10675_v56 }
  0x7d   : > { %8944 = vmatmul.mubr.msk.f32.gmra.mrb[20].mxu0 %vm265_vm1, %v10682_v57 }
  0x7e   : > { %8946 = vmatprep.mubr.msk.f32.mxu0 %vm265_vm1, %v10685_v58 }
  0x81   : > { %8947 = vmatmul.mubr.msk.f32.gmra.mrb[22].mxu0 %vm265_vm1, %v10692_v59 }
  0x82   : > { %8949 = vmatprep.mubr.msk.f32.mxu0 %vm265_vm1, %v10695_v60 }
  0x85   : > { %8950 = vmatmul.mubr.msk.f32.gmra.mrb[24].mxu0 %vm265_vm1, %v10702_v61 }
  0x86   : > { %8952 = vmatprep.mubr.msk.f32.mxu0 %vm265_vm1, %v10705_v62 }
  0x89   : > { %8953 = vmatmul.mubr.msk.f32.gmra.mrb[26].mxu0 %vm265_vm1, %v10712_v63 }
  0x8a   : > { %8955 = vmatprep.mubr.msk.f32.mxu0 %vm265_vm1, %v10715_v0 }
  0x8d   : > { %8956 = vmatmul.mubr.msk.f32.gmra.mrb[28].mxu0 %vm265_vm1, %v10722_v1  ;;  %v10745_v1 = vld [vmem:[%s12402_s1 + $0x10] sm:$0xf] }
  0x8e   : > { %8958 = vmatprep.mubr.msk.f32.mxu0 %vm265_vm1, %v10725_v2  ;;  %v10778_v2 = vld [vmem:[%s10409_s27 + $0x62] sm:$0xff] }
  0x8f   : > { %12509 = vst [vmem:[#allocation17_spill] sm:$0xff] %v10778_v2 }
  0x91   : > { %8959 = vmatmul.mubr.msk.f32.gmra.mrb[30].mxu0 %vm265_vm1, %v10732_v3  ;;  %v10756_v3 = vld [vmem:[%s10409_s27 + $0x32] sm:$0xff] }
  0x92   : > { %8963 = vmatprep.mubr.msk.f32.mxu0 %vm265_vm1, %v1013_v5  ;;  %v10753_v5 = vld [vmem:[%s10409_s27 + $0x22] sm:$0xff]  ;;  %12505 = vst [vmem:[#allocation13_spill] sm:$0xff] %v10756_v3 }
  0x93   : > { %12504 = vst [vmem:[#allocation12_spill] sm:$0xff] %v10753_v5 }
  0x95   : > { %8964 = vmatmul.mubr.msk.f32.vlgmr.msra.gmra.mrb[0].mxu0 %vm265_vm1, %v1014_v35  ;;  %v10768_v35 = vld [vmem:[%s10409_s27 + $0x4a] sm:$0xff] }
  0x96   : > { %9012 = vmatpush3.msk.msra.mxu0 %vm362_vm0, %v10582_v38  ;;  %8966 = vmatprep.mubr.msk.f32.mxu0 %vm265_vm1, %v10740_v36  ;;  %v10765_v38 = vld [vmem:[%s10409_s27 + $0x3a] sm:$0xff]  ;;  %12507 = vst [vmem:[#allocation15_spill] sm:$0xff] %v10768_v35  ;;  %v10775_v36 = vld [vmem:[%s10409_s27 + $0x52] sm:$0xff] }
  0x97   : > { %9061 = vmatprep.subr.msk.mxu0 %vm362_vm0, %v10745_v1  ;;  %12506 = vst [vmem:[#allocation14_spill] sm:$0xff] %v10765_v38  ;;  %12508 = vst [vmem:[#allocation16_spill] sm:$0xff] %v10775_v36 }
  0x99   : > { %8967 = vmatmul.mubr.msk.f32.gmra.mrb[2].mxu0 %vm265_vm1, %v10753_v5  ;;  %v10788_v5 = vld [vmem:[%s10409_s27 + $0x7a] sm:$0xff] }
  0x9a   : > { %8969 = vmatprep.mubr.msk.f32.mxu0 %vm265_vm1, %v10756_v3  ;;  %v10785_v3 = vld [vmem:[%s10409_s27 + $0x6a] sm:$0xff]  ;;  %12511 = vst [vmem:[#allocation19_spill] sm:$0xff] %v10788_v5 }
  0x9b   : > { %12510 = vst [vmem:[#allocation18_spill] sm:$0xff] %v10785_v3 }
  0x9d   : > { %8970 = vmatmul.mubr.msk.f32.gmra.mrb[4].mxu0 %vm265_vm1, %v10765_v38  ;;  %v10798_v38 = vld [vmem:[%s10409_s27 + $0x92] sm:$0xff] }
  0x9e   : > { %8972 = vmatprep.mubr.msk.f32.mxu0 %vm265_vm1, %v10768_v35  ;;  %v10795_v35 = vld [vmem:[%s10409_s27 + $0x82] sm:$0xff]  ;;  %12513 = vst [vmem:[#allocation21_spill] sm:$0xff] %v10798_v38 }
  0x9f   : > { %12512 = vst [vmem:[#allocation20_spill] sm:$0xff] %v10795_v35 }
  0xa1   : > { %8973 = vmatmul.mubr.msk.f32.gmra.mrb[6].mxu0 %vm265_vm1, %v10775_v36  ;;  %v10808_v36 = vld [vmem:[%s10409_s27 + $0xaa] sm:$0xff] }
  0xa2   : > { %8975 = vmatprep.mubr.msk.f32.mxu0 %vm265_vm1, %v10778_v2  ;;  %v10805_v2 = vld [vmem:[%s10409_s27 + $0x9a] sm:$0xff]  ;;  %12515 = vst [vmem:[#allocation23_spill] sm:$0xff] %v10808_v36 }
  0xa3   : > { %12514 = vst [vmem:[#allocation22_spill] sm:$0xff] %v10805_v2 }
  0xa5   : > { %8976 = vmatmul.mubr.msk.f32.gmra.mrb[8].mxu0 %vm265_vm1, %v10785_v3  ;;  %v10818_v3 = vld [vmem:[%s10409_s27 + $0xc2] sm:$0xff] }
  0xa6   : > { %8978 = vmatprep.mubr.msk.f32.mxu0 %vm265_vm1, %v10788_v5  ;;  %v10815_v5 = vld [vmem:[%s10409_s27 + $0xb2] sm:$0xff]  ;;  %12517 = vst [vmem:[#allocation25_spill] sm:$0xff] %v10818_v3 }
  0xa7   : > { %12516 = vst [vmem:[#allocation24_spill] sm:$0xff] %v10815_v5 }
  0xa9   : > { %8979 = vmatmul.mubr.msk.f32.gmra.mrb[10].mxu0 %vm265_vm1, %v10795_v35  ;;  %v10828_v35 = vld [vmem:[%s10409_s27 + $0xda] sm:$0xff] }
  0xaa   : > { %8981 = vmatprep.mubr.msk.f32.mxu0 %vm265_vm1, %v10798_v38  ;;  %v10825_v38 = vld [vmem:[%s10409_s27 + $0xca] sm:$0xff]  ;;  %12519 = vst [vmem:[#allocation27_spill] sm:$0xff] %v10828_v35 }
  0xab   : > { %12518 = vst [vmem:[#allocation26_spill] sm:$0xff] %v10825_v38 }
  0xad   : > { %8982 = vmatmul.mubr.msk.f32.gmra.mrb[12].mxu0 %vm265_vm1, %v10805_v2  ;;  %v10838_v2 = vld [vmem:[%s10409_s27 + $0xf2] sm:$0xff] }
  0xae   : > { %8984 = vmatprep.mubr.msk.f32.mxu0 %vm265_vm1, %v10808_v36  ;;  %v10835_v36 = vld [vmem:[%s10409_s27 + $0xe2] sm:$0xff]  ;;  %12521 = vst [vmem:[#allocation29_spill] sm:$0xff] %v10838_v2 }
  0xaf   : > { %12520 = vst [vmem:[#allocation28_spill] sm:$0xff] %v10835_v36 }
  0xb1   : > { %8985 = vmatmul.mubr.msk.f32.gmra.mrb[14].mxu0 %vm265_vm1, %v10815_v5  ;;  %v10848_v5 = vld [vmem:[%s10409_s27 + $0x10a] sm:$0xff] }
  0xb2   : > { %8987 = vmatprep.mubr.msk.f32.mxu0 %vm265_vm1, %v10818_v3  ;;  %v10845_v3 = vld [vmem:[%s10409_s27 + $0xfa] sm:$0xff]  ;;  %12523 = vst [vmem:[#allocation31_spill] sm:$0xff] %v10848_v5 }
  0xb3   : > { %12522 = vst [vmem:[#allocation30_spill] sm:$0xff] %v10845_v3 }
  0xb5   : > { %8988 = vmatmul.mubr.msk.f32.gmra.mrb[16].mxu0 %vm265_vm1, %v10825_v38  ;;  %v10858_v38 = vld [vmem:[%s10409_s27 + $0x122] sm:$0xff] }
  0xb6   : > { %8990 = vmatprep.mubr.msk.f32.mxu0 %vm265_vm1, %v10828_v35  ;;  %v10855_v35 = vld [vmem:[%s10409_s27 + $0x112] sm:$0xff]  ;;  %12525 = vst [vmem:[#allocation33_spill] sm:$0xff] %v10858_v38 }
  0xb7   : > { %12524 = vst [vmem:[#allocation32_spill] sm:$0xff] %v10855_v35 }
  0xb9   : > { %8991 = vmatmul.mubr.msk.f32.gmra.mrb[18].mxu0 %vm265_vm1, %v10835_v36  ;;  %v10868_v36 = vld [vmem:[%s10409_s27 + $0x13a] sm:$0xff] }
  0xba   : > { %8993 = vmatprep.mubr.msk.f32.mxu0 %vm265_vm1, %v10838_v2  ;;  %v10865_v2 = vld [vmem:[%s10409_s27 + $0x12a] sm:$0xff]  ;;  %12526 = vst [vmem:[#allocation34_spill] sm:$0xff] %v10868_v36 }
  0xbd   : > { %8994 = vmatmul.mubr.msk.f32.gmra.mrb[20].mxu0 %vm265_vm1, %v10845_v3  ;;  %v10878_v3 = vld [vmem:[%s10409_s27 + $0x152] sm:$0xff] }
  0xbe   : > { %8996 = vmatprep.mubr.msk.f32.mxu0 %vm265_vm1, %v10848_v5  ;;  %v10875_v5 = vld [vmem:[%s10409_s27 + $0x142] sm:$0xff]  ;;  %12527 = vst [vmem:[#allocation35_spill] sm:$0xff] %v10878_v3 }
  0xc1   : > { %8997 = vmatmul.mubr.msk.f32.gmra.mrb[22].mxu0 %vm265_vm1, %v10855_v35  ;;  %v10888_v35 = vld [vmem:[%s10409_s27 + $0x16a] sm:$0xff] }
  0xc2   : > { %8999 = vmatprep.mubr.msk.f32.mxu0 %vm265_vm1, %v10858_v38  ;;  %v10885_v38 = vld [vmem:[%s10409_s27 + $0x15a] sm:$0xff]  ;;  %12528 = vst [vmem:[#allocation36_spill] sm:$0xff] %v10888_v35 }
  0xc5   : > { %9000 = vmatmul.mubr.msk.f32.gmra.mrb[24].mxu0 %vm265_vm1, %v10865_v2 }
  0xc6   : > { %9002 = vmatprep.mubr.msk.f32.mxu0 %vm265_vm1, %v10868_v36  ;;  %v10895_v36 = vld [vmem:[%s10409_s27 + $0x172] sm:$0xff] }
  0xc9   : > { %9003 = vmatmul.mubr.msk.f32.gmra.mrb[26].mxu0 %vm265_vm1, %v10875_v5 }
  0xca   : > { %9005 = vmatprep.mubr.msk.f32.mxu0 %vm265_vm1, %v10878_v3  ;;  %v7735_v3 = vld [vmem:[%s12402_s1 + $0x14] sm:$0xf] }
  0xcd   : > { %9006 = vmatmul.mubr.msk.f32.gmra.mrb[28].mxu0 %vm265_vm1, %v10885_v38 }
  0xce   : > { %9008 = vmatprep.mubr.msk.f32.mxu0 %vm265_vm1, %v10888_v35 }
  0xd1   : > { %9009 = vmatmul.mubr.msk.f32.gmra.mrb[30].mxu0 %vm265_vm1, %v10895_v36 }
  0xd2   : > { %9013 = vmatprep.mubr.msk.f32.mxu0 %vm265_vm1, %v10414_v4  ;;  %v10964_v4 = vld [vmem:[%s10409_s27 + $0x180] sm:$0xff] }
  0xd5   : > { %9014 = vmatmul.mubr.msk.f32.vlgmr.msra.gmra.mrb[0].mxu0 %vm265_vm1, %v10427_v6  ;;  %v10971_v6 = vld [vmem:[%s10409_s27 + $0x188] sm:$0xff] }
  0xd6   : > { %9062 = vmatpush3.msk.msra.mxu0 %vm362_vm0, %v10745_v1  ;;  %9016 = vmatprep.mubr.msk.f32.mxu0 %vm265_vm1, %v10430_v7  ;;  %v7801_v1 = vld [vmem:[%s12402_s1 + $0x18] sm:$0xf] }
  0xd7   : > { %9111 = vmatprep.subr.msk.mxu0 %vm362_vm0, %v7735_v3 }
  0xd9   : > { %9017 = vmatmul.mubr.msk.f32.gmra.mrb[2].mxu0 %vm265_vm1, %v10439_v8 }
  0xda   : > { %9019 = vmatprep.mubr.msk.f32.mxu0 %vm265_vm1, %v10442_v9 }
  0xdd   : > { %9020 = vmatmul.mubr.msk.f32.gmra.mrb[4].mxu0 %vm265_vm1, %v10449_v10 }
  0xde   : > { %9022 = vmatprep.mubr.msk.f32.mxu0 %vm265_vm1, %v10452_v11 }
  0xe1   : > { %9023 = vmatmul.mubr.msk.f32.gmra.mrb[6].mxu0 %vm265_vm1, %v10459_v12 }
  0xe2   : > { %9025 = vmatprep.mubr.msk.f32.mxu0 %vm265_vm1, %v10462_v13 }
  0xe5   : > { %9026 = vmatmul.mubr.msk.f32.gmra.mrb[8].mxu0 %vm265_vm1, %v10469_v14 }
  0xe6   : > { %9028 = vmatprep.mubr.msk.f32.mxu0 %vm265_vm1, %v10472_v15 }
  0xe9   : > { %9029 = vmatmul.mubr.msk.f32.gmra.mrb[10].mxu0 %vm265_vm1, %v10479_v16 }
  0xea   : > { %9031 = vmatprep.mubr.msk.f32.mxu0 %vm265_vm1, %v10482_v17 }
  0xed   : > { %9032 = vmatmul.mubr.msk.f32.gmra.mrb[12].mxu0 %vm265_vm1, %v10489_v18 }
  0xee   : > { %9034 = vmatprep.mubr.msk.f32.mxu0 %vm265_vm1, %v10492_v19 }
  0xf1   : > { %9035 = vmatmul.mubr.msk.f32.gmra.mrb[14].mxu0 %vm265_vm1, %v10499_v20 }
  0xf2   : > { %9037 = vmatprep.mubr.msk.f32.mxu0 %vm265_vm1, %v10502_v21 }
  0xf5   : > { %9038 = vmatmul.mubr.msk.f32.gmra.mrb[16].mxu0 %vm265_vm1, %v10509_v22 }
  0xf6   : > { %9040 = vmatprep.mubr.msk.f32.mxu0 %vm265_vm1, %v10512_v23 }
  0xf9   : > { %9041 = vmatmul.mubr.msk.f32.gmra.mrb[18].mxu0 %vm265_vm1, %v10519_v24 }
  0xfa   : > { %9043 = vmatprep.mubr.msk.f32.mxu0 %vm265_vm1, %v10522_v25 }
  0xfd   : > { %9044 = vmatmul.mubr.msk.f32.gmra.mrb[20].mxu0 %vm265_vm1, %v10529_v26 }
  0xfe   : > { %9046 = vmatprep.mubr.msk.f32.mxu0 %vm265_vm1, %v10532_v27 }
 0x101   : > { %9047 = vmatmul.mubr.msk.f32.gmra.mrb[22].mxu0 %vm265_vm1, %v10539_v28 }
 0x102   : > { %9049 = vmatprep.mubr.msk.f32.mxu0 %vm265_vm1, %v10542_v29 }
 0x105   : > { %9050 = vmatmul.mubr.msk.f32.gmra.mrb[24].mxu0 %vm265_vm1, %v10549_v30 }
 0x106   : > { %9052 = vmatprep.mubr.msk.f32.mxu0 %vm265_vm1, %v10552_v31 }
 0x109   : > { %9053 = vmatmul.mubr.msk.f32.gmra.mrb[26].mxu0 %vm265_vm1, %v10559_v32 }
 0x10a   : > { %9055 = vmatprep.mubr.msk.f32.mxu0 %vm265_vm1, %v10562_v33 }
 0x10d   : > { %9056 = vmatmul.mubr.msk.f32.gmra.mrb[28].mxu0 %vm265_vm1, %v10569_v34 }
 0x10e   : > { %9058 = vmatprep.mubr.msk.f32.mxu0 %vm265_vm1, %v10964_v4 }
 0x111   : > { %9059 = vmatmul.mubr.msk.f32.gmra.mrb[30].mxu0 %vm265_vm1, %v10971_v6 }
 0x112   : > { %9063 = vmatprep.mubr.msk.f32.mxu0 %vm265_vm1, %v10577_v37  ;;  %v12529_v37 = vld [vmem:[#allocation8_spill] sm:$0xff] }
 0x115   : > { %9064 = vmatmul.mubr.msk.f32.vlgmr.msra.gmra.mrb[0].mxu0 %vm265_vm1, %v10590_v39  ;;  %v12530_v39 = vld [vmem:[#allocation9_spill] sm:$0xff] }
 0x116   : > { %9112 = vmatpush3.msk.msra.mxu0 %vm362_vm0, %v7735_v3  ;;  %9066 = vmatprep.mubr.msk.f32.mxu0 %vm265_vm1, %v10593_v40  ;;  %v11039_v3 = vld [vmem:[%s10409_s27 + $0x181] sm:$0xff] }
 0x117   : > { %9161 = vmatprep.subr.msk.mxu0 %vm362_vm0, %v7801_v1  ;;  %12531 = vst [vmem:[#allocation37_spill] sm:$0xff] %v11039_v3 }
 0x119   : > { %9067 = vmatmul.mubr.msk.f32.gmra.mrb[2].mxu0 %vm265_vm1, %v10602_v41 }
 0x11a   : > { %9069 = vmatprep.mubr.msk.f32.mxu0 %vm265_vm1, %v10605_v42 }
 0x11d   : > { %9070 = vmatmul.mubr.msk.f32.gmra.mrb[4].mxu0 %vm265_vm1, %v10612_v43 }
 0x11e   : > { %9072 = vmatprep.mubr.msk.f32.mxu0 %vm265_vm1, %v10615_v44 }
 0x121   : > { %9073 = vmatmul.mubr.msk.f32.gmra.mrb[6].mxu0 %vm265_vm1, %v10622_v45 }
 0x122   : > { %9075 = vmatprep.mubr.msk.f32.mxu0 %vm265_vm1, %v10625_v46 }
 0x125   : > { %9076 = vmatmul.mubr.msk.f32.gmra.mrb[8].mxu0 %vm265_vm1, %v10632_v47 }
 0x126   : > { %9078 = vmatprep.mubr.msk.f32.mxu0 %vm265_vm1, %v10635_v48 }
 0x129   : > { %9079 = vmatmul.mubr.msk.f32.gmra.mrb[10].mxu0 %vm265_vm1, %v10642_v49 }
 0x12a   : > { %9081 = vmatprep.mubr.msk.f32.mxu0 %vm265_vm1, %v10645_v50 }
 0x12d   : > { %9082 = vmatmul.mubr.msk.f32.gmra.mrb[12].mxu0 %vm265_vm1, %v10652_v51 }
 0x12e   : > { %9084 = vmatprep.mubr.msk.f32.mxu0 %vm265_vm1, %v10655_v52 }
 0x131   : > { %9085 = vmatmul.mubr.msk.f32.gmra.mrb[14].mxu0 %vm265_vm1, %v10662_v53 }
 0x132   : > { %9087 = vmatprep.mubr.msk.f32.mxu0 %vm265_vm1, %v10665_v54 }
 0x135   : > { %9088 = vmatmul.mubr.msk.f32.gmra.mrb[16].mxu0 %vm265_vm1, %v10672_v55 }
 0x136   : > { %9090 = vmatprep.mubr.msk.f32.mxu0 %vm265_vm1, %v10675_v56 }
 0x139   : > { %9091 = vmatmul.mubr.msk.f32.gmra.mrb[18].mxu0 %vm265_vm1, %v10682_v57 }
 0x13a   : > { %9093 = vmatprep.mubr.msk.f32.mxu0 %vm265_vm1, %v10685_v58 }
 0x13d   : > { %9094 = vmatmul.mubr.msk.f32.gmra.mrb[20].mxu0 %vm265_vm1, %v10692_v59 }
 0x13e   : > { %9096 = vmatprep.mubr.msk.f32.mxu0 %vm265_vm1, %v10695_v60  ;;  %v12532_v60 = vld [vmem:[#allocation10_spill] sm:$0xff] }
 0x141   : > { %9097 = vmatmul.mubr.msk.f32.gmra.mrb[22].mxu0 %vm265_vm1, %v10702_v61  ;;  %v12544_v61 = vld [vmem:[#allocation21_spill] sm:$0xff] }
 0x142   : > { %9099 = vmatprep.mubr.msk.f32.mxu0 %vm265_vm1, %v10705_v62  ;;  %v11046_v62 = vld [vmem:[%s10409_s27 + $0x189] sm:$0xff] }
 0x143   : > { %12533 = vst [vmem:[#allocation38_spill] sm:$0xff] %v11046_v62 }
 0x145   : > { %9100 = vmatmul.mubr.msk.f32.gmra.mrb[24].mxu0 %vm265_vm1, %v10712_v63  ;;  %v12540_v63 = vld [vmem:[#allocation17_spill] sm:$0xff] }
 0x146   : > { %9102 = vmatprep.mubr.msk.f32.mxu0 %vm265_vm1, %v10715_v0  ;;  %v12534_v0 = vld [vmem:[#allocation11_spill] sm:$0xff] }
 0x149   : > { %9103 = vmatmul.mubr.msk.f32.gmra.mrb[26].mxu0 %vm265_vm1, %v12529_v37  ;;  %v12535_v37 = vld [vmem:[#allocation12_spill] sm:$0xff] }
 0x14a   : > { %9105 = vmatprep.mubr.msk.f32.mxu0 %vm265_vm1, %v12530_v39  ;;  %v7867_v39 = vld [vmem:[%s12402_s1 + $0x1c] sm:$0xf] }
 0x14d   : > { %9106 = vmatmul.mubr.msk.f32.gmra.mrb[28].mxu0 %vm265_vm1, %v12532_v60  ;;  %v12536_v60 = vld [vmem:[#allocation13_spill] sm:$0xff] }
 0x14e   : > { %9108 = vmatprep.mubr.msk.f32.mxu0 %vm265_vm1, %v11039_v3  ;;  %v12537_v3 = vld [vmem:[#allocation14_spill] sm:$0xff] }
 0x151   : > { %9109 = vmatmul.mubr.msk.f32.gmra.mrb[30].mxu0 %vm265_vm1, %v11046_v62  ;;  %v12538_v62 = vld [vmem:[#allocation15_spill] sm:$0xff] }
 0x152   : > { %9113 = vmatprep.mubr.msk.f32.mxu0 %vm265_vm1, %v12534_v0  ;;  %v12539_v0 = vld [vmem:[#allocation16_spill] sm:$0xff] }
 0x155   : > { %9114 = vmatmul.mubr.msk.f32.vlgmr.msra.gmra.mrb[0].mxu0 %vm265_vm1, %v12535_v37  ;;  %v12541_v37 = vld [vmem:[#allocation18_spill] sm:$0xff] }
 0x156   : > { %9162 = vmatpush3.msk.msra.mxu0 %vm362_vm0, %v7801_v1  ;;  %9116 = vmatprep.mubr.msk.f32.mxu0 %vm265_vm1, %v12536_v60  ;;  %v12542_v1 = vld [vmem:[#allocation19_spill] sm:$0xff]  ;;  %v12543_v60 = vld [vmem:[#allocation20_spill] sm:$0xff] }
 0x157   : > { %9211 = vmatprep.subr.msk.mxu0 %vm362_vm0, %v7867_v39 }
 0x159   : > { %9117 = vmatmul.mubr.msk.f32.gmra.mrb[2].mxu0 %vm265_vm1, %v12537_v3  ;;  %v12545_v3 = vld [vmem:[#allocation22_spill] sm:$0xff] }
 0x15a   : > { %9119 = vmatprep.mubr.msk.f32.mxu0 %vm265_vm1, %v12538_v62  ;;  %v12546_v62 = vld [vmem:[#allocation23_spill] sm:$0xff] }
 0x15d   : > { %9120 = vmatmul.mubr.msk.f32.gmra.mrb[4].mxu0 %vm265_vm1, %v12539_v0  ;;  %v12547_v0 = vld [vmem:[#allocation24_spill] sm:$0xff] }
 0x15e   : > { %9122 = vmatprep.mubr.msk.f32.mxu0 %vm265_vm1, %v12540_v63  ;;  %v12548_v63 = vld [vmem:[#allocation25_spill] sm:$0xff] }
 0x161   : > { %9123 = vmatmul.mubr.msk.f32.gmra.mrb[6].mxu0 %vm265_vm1, %v12541_v37 }
 0x162   : > { %9125 = vmatprep.mubr.msk.f32.mxu0 %vm265_vm1, %v12542_v1  ;;  %v12549_v1 = vld [vmem:[#allocation26_spill] sm:$0xff] }
 0x165   : > { %9126 = vmatmul.mubr.msk.f32.gmra.mrb[8].mxu0 %vm265_vm1, %v12543_v60  ;;  %v12550_v60 = vld [vmem:[#allocation27_spill] sm:$0xff] }
 0x166   : > { %9128 = vmatprep.mubr.msk.f32.mxu0 %vm265_vm1, %v12544_v61  ;;  %v12551_v61 = vld [vmem:[#allocation28_spill] sm:$0xff] }
 0x169   : > { %9129 = vmatmul.mubr.msk.f32.gmra.mrb[10].mxu0 %vm265_vm1, %v12545_v3  ;;  %v12552_v3 = vld [vmem:[#allocation29_spill] sm:$0xff] }
 0x16a   : > { %9131 = vmatprep.mubr.msk.f32.mxu0 %vm265_vm1, %v12546_v62  ;;  %v12553_v62 = vld [vmem:[#allocation30_spill] sm:$0xff] }
 0x16d   : > { %9132 = vmatmul.mubr.msk.f32.gmra.mrb[12].mxu0 %vm265_vm1, %v12547_v0  ;;  %v12554_v0 = vld [vmem:[#allocation31_spill] sm:$0xff] }
 0x16e   : > { %9134 = vmatprep.mubr.msk.f32.mxu0 %vm265_vm1, %v12548_v63  ;;  %v12555_v63 = vld [vmem:[#allocation32_spill] sm:$0xff] }
 0x171   : > { %9135 = vmatmul.mubr.msk.f32.gmra.mrb[14].mxu0 %vm265_vm1, %v12549_v1  ;;  %v12556_v1 = vld [vmem:[#allocation33_spill] sm:$0xff] }
 0x172   : > { %9137 = vmatprep.mubr.msk.f32.mxu0 %vm265_vm1, %v12550_v60  ;;  %v12557_v60 = vld [vmem:[#allocation34_spill] sm:$0xff] }
 0x175   : > { %9138 = vmatmul.mubr.msk.f32.gmra.mrb[16].mxu0 %vm265_vm1, %v12551_v61 }
 0x176   : > { %9140 = vmatprep.mubr.msk.f32.mxu0 %vm265_vm1, %v12552_v3  ;;  %v12558_v3 = vld [vmem:[#allocation35_spill] sm:$0xff] }
 0x179   : > { %9141 = vmatmul.mubr.msk.f32.gmra.mrb[18].mxu0 %vm265_vm1, %v12553_v62 }
 0x17a   : > { %9143 = vmatprep.mubr.msk.f32.mxu0 %vm265_vm1, %v12554_v0 }
 0x17d   : > { %9144 = vmatmul.mubr.msk.f32.gmra.mrb[20].mxu0 %vm265_vm1, %v12555_v63  ;;  %v11114_v63 = vld [vmem:[%s10409_s27 + $0x182] sm:$0xff] }
 0x17e   : > { %9146 = vmatprep.mubr.msk.f32.mxu0 %vm265_vm1, %v12556_v1 }
 0x181   : > { %9147 = vmatmul.mubr.msk.f32.gmra.mrb[22].mxu0 %vm265_vm1, %v10865_v2 }
 0x182   : > { %9149 = vmatprep.mubr.msk.f32.mxu0 %vm265_vm1, %v12557_v60  ;;  %v11121_v60 = vld [vmem:[%s10409_s27 + $0x18a] sm:$0xff] }
 0x185   : > { %9150 = vmatmul.mubr.msk.f32.gmra.mrb[24].mxu0 %vm265_vm1, %v10875_v5 }
 0x186   : > { %9152 = vmatprep.mubr.msk.f32.mxu0 %vm265_vm1, %v12558_v3 }
 0x189   : > { %9153 = vmatmul.mubr.msk.f32.gmra.mrb[26].mxu0 %vm265_vm1, %v10885_v38 }
 0x18a   : > { %9155 = vmatprep.mubr.msk.f32.mxu0 %vm265_vm1, %v10888_v35  ;;  %v7933_v35 = vld [vmem:[%s12402_s1 + $0x20] sm:$0xf] }
 0x18d   : > { %9156 = vmatmul.mubr.msk.f32.gmra.mrb[28].mxu0 %vm265_vm1, %v10895_v36 }
 0x18e   : > { %9158 = vmatprep.mubr.msk.f32.mxu0 %vm265_vm1, %v11114_v63 }
 0x191   : > { %9159 = vmatmul.mubr.msk.f32.gmra.mrb[30].mxu0 %vm265_vm1, %v11121_v60 }
 0x192   : > { %9163 = vmatprep.mubr.msk.f32.mxu0 %vm265_vm1, %v10430_v7  ;;  %v7799_v7 = vld [vmem:[%s10409_s27 + $0x198] sm:$0xff] }
 0x195   : > { %9164 = vmatmul.mubr.msk.f32.vlgmr.msra.gmra.mrb[0].mxu0 %vm265_vm1, %v10439_v8  ;;  %v7800_v8 = vld [vmem:[%s10409_s27 + $0x1a0] sm:$0xff] }
 0x196   : > { %9212 = vmatpush3.msk.msra.mxu0 %vm362_vm0, %v7867_v39  ;;  %9166 = vmatprep.mubr.msk.f32.mxu0 %vm265_vm1, %v10442_v9  ;;  %v12559_v9 = vld [vmem:[#allocation3_spill] sm:$0xff] }
 0x197   : > { %9261 = vmatprep.subr.msk.mxu0 %vm362_vm0, %v7933_v35 }
 0x199   : > { %9167 = vmatmul.mubr.msk.f32.gmra.mrb[2].mxu0 %vm265_vm1, %v10449_v10  ;;  %v12560_v10 = vld [vmem:[#allocation4_spill] sm:$0xff] }
 0x19a   : > { %9169 = vmatprep.mubr.msk.f32.mxu0 %vm265_vm1, %v10452_v11  ;;  %v12561_v11 = vld [vmem:[#allocation5_spill] sm:$0xff] }
 0x19d   : > { %9170 = vmatmul.mubr.msk.f32.gmra.mrb[4].mxu0 %vm265_vm1, %v10459_v12  ;;  %v12562_v12 = vld [vmem:[#allocation6_spill] sm:$0xff] }
 0x19e   : > { %9172 = vmatprep.mubr.msk.f32.mxu0 %vm265_vm1, %v10462_v13  ;;  %v12563_v13 = vld [vmem:[#allocation7_spill] sm:$0xff] }
 0x1a1   : > { %9173 = vmatmul.mubr.msk.f32.gmra.mrb[6].mxu0 %vm265_vm1, %v10469_v14  ;;  %v12564_v14 = vld [vmem:[#allocation8_spill] sm:$0xff] }
 0x1a2   : > { %9175 = vmatprep.mubr.msk.f32.mxu0 %vm265_vm1, %v10472_v15  ;;  %v12565_v15 = vld [vmem:[#allocation9_spill] sm:$0xff] }
 0x1a5   : > { %9176 = vmatmul.mubr.msk.f32.gmra.mrb[8].mxu0 %vm265_vm1, %v10479_v16  ;;  %v12566_v16 = vld [vmem:[#allocation10_spill] sm:$0xff] }
 0x1a6   : > { %9178 = vmatprep.mubr.msk.f32.mxu0 %vm265_vm1, %v10482_v17  ;;  %v12567_v17 = vld [vmem:[#allocation37_spill] sm:$0xff] }
 0x1a9   : > { %9179 = vmatmul.mubr.msk.f32.gmra.mrb[10].mxu0 %vm265_vm1, %v10489_v18  ;;  %v7865_v18 = vld [vmem:[%s10409_s27 + $0x199] sm:$0xff] }
 0x1aa   : > { %9181 = vmatprep.mubr.msk.f32.mxu0 %vm265_vm1, %v10492_v19  ;;  %v12568_v19 = vld [vmem:[#allocation38_spill] sm:$0xff] }
 0x1ad   : > { %9182 = vmatmul.mubr.msk.f32.gmra.mrb[12].mxu0 %vm265_vm1, %v10499_v20  ;;  %v7866_v20 = vld [vmem:[%s10409_s27 + $0x1a1] sm:$0xff] }
 0x1ae   : > { %9184 = vmatprep.mubr.msk.f32.mxu0 %vm265_vm1, %v10502_v21  ;;  %v12569_v21 = vld [vmem:[#allocation13_spill] sm:$0xff] }
 0x1b1   : > { %9185 = vmatmul.mubr.msk.f32.gmra.mrb[14].mxu0 %vm265_vm1, %v10509_v22  ;;  %v12570_v22 = vld [vmem:[#allocation14_spill] sm:$0xff] }
 0x1b2   : > { %9187 = vmatprep.mubr.msk.f32.mxu0 %vm265_vm1, %v10512_v23  ;;  %v12571_v23 = vld [vmem:[#allocation15_spill] sm:$0xff] }
 0x1b5   : > { %9188 = vmatmul.mubr.msk.f32.gmra.mrb[16].mxu0 %vm265_vm1, %v10519_v24  ;;  %v12572_v24 = vld [vmem:[#allocation16_spill] sm:$0xff] }
 0x1b6   : > { %9190 = vmatprep.mubr.msk.f32.mxu0 %vm265_vm1, %v10522_v25  ;;  %v12573_v25 = vld [vmem:[#allocation17_spill] sm:$0xff] }
 0x1b9   : > { %9191 = vmatmul.mubr.msk.f32.gmra.mrb[18].mxu0 %vm265_vm1, %v10529_v26  ;;  %v12574_v26 = vld [vmem:[#allocation19_spill] sm:$0xff] }
 0x1ba   : > { %9193 = vmatprep.mubr.msk.f32.mxu0 %vm265_vm1, %v10532_v27  ;;  %v12575_v27 = vld [vmem:[#allocation20_spill] sm:$0xff] }
 0x1bd   : > { %9194 = vmatmul.mubr.msk.f32.gmra.mrb[20].mxu0 %vm265_vm1, %v10539_v28  ;;  %v12576_v28 = vld [vmem:[#allocation21_spill] sm:$0xff] }
 0x1be   : > { %9196 = vmatprep.mubr.msk.f32.mxu0 %vm265_vm1, %v10542_v29  ;;  %v12577_v29 = vld [vmem:[#allocation22_spill] sm:$0xff] }
 0x1c1   : > { %9197 = vmatmul.mubr.msk.f32.gmra.mrb[22].mxu0 %vm265_vm1, %v10549_v30  ;;  %v12578_v30 = vld [vmem:[#allocation23_spill] sm:$0xff] }
 0x1c2   : > { %9199 = vmatprep.mubr.msk.f32.mxu0 %vm265_vm1, %v10552_v31  ;;  %v12579_v31 = vld [vmem:[#allocation24_spill] sm:$0xff] }
 0x1c5   : > { %9200 = vmatmul.mubr.msk.f32.gmra.mrb[24].mxu0 %vm265_vm1, %v10559_v32  ;;  %v12580_v32 = vld [vmem:[#allocation25_spill] sm:$0xff] }
 0x1c6   : > { %9202 = vmatprep.mubr.msk.f32.mxu0 %vm265_vm1, %v10562_v33  ;;  %v12581_v33 = vld [vmem:[#allocation26_spill] sm:$0xff] }
 0x1c9   : > { %9203 = vmatmul.mubr.msk.f32.gmra.mrb[26].mxu0 %vm265_vm1, %v10569_v34  ;;  %v12582_v34 = vld [vmem:[#allocation27_spill] sm:$0xff] }
 0x1ca   : > { %9205 = vmatprep.mubr.msk.f32.mxu0 %vm265_vm1, %v10964_v4 }
 0x1cd   : > { %9206 = vmatmul.mubr.msk.f32.gmra.mrb[28].mxu0 %vm265_vm1, %v10971_v6 }
 0x1ce   : > { %9208 = vmatprep.mubr.msk.f32.mxu0 %vm265_vm1, %v7799_v7 }
 0x1d1   : > { %9209 = vmatmul.mubr.msk.f32.gmra.mrb[30].mxu0 %vm265_vm1, %v7800_v8 }
 0x1d2   : > { %9213 = vmatprep.mubr.msk.f32.mxu0 %vm265_vm1, %v10593_v40  ;;  %v12583_v40 = vld [vmem:[#allocation29_spill] sm:$0xff] }
 0x1d5   : > { %9214 = vmatmul.mubr.msk.f32.vlgmr.msra.gmra.mrb[0].mxu0 %vm265_vm1, %v10602_v41  ;;  %v12584_v41 = vld [vmem:[#allocation32_spill] sm:$0xff] }
 0x1d6   : > { %9262 = vmatpush3.msk.msra.mxu0 %vm362_vm0, %v7933_v35  ;;  %9216 = vmatprep.mubr.msk.f32.mxu0 %vm265_vm1, %v10605_v42  ;;  %v12585_v42 = vld [vmem:[#allocation34_spill] sm:$0xff] }
 0x1d9   : > { %9217 = vmatmul.mubr.msk.f32.gmra.mrb[2].mxu0 %vm265_vm1, %v10612_v43  ;;  %v12586_v43 = vld [vmem:[#allocation36_spill] sm:$0xff] }
 0x1da   : > { %9219 = vmatprep.mubr.msk.f32.mxu0 %vm265_vm1, %v10615_v44  ;;  %v7931_v44 = vld [vmem:[%s10409_s27 + $0x19a] sm:$0xff] }
 0x1dd   : > { %9220 = vmatmul.mubr.msk.f32.gmra.mrb[4].mxu0 %vm265_vm1, %v10622_v45  ;;  %v7932_v45 = vld [vmem:[%s10409_s27 + $0x1a2] sm:$0xff] }
 0x1de   : > { %9222 = vmatprep.mubr.msk.f32.mxu0 %vm265_vm1, %v10625_v46  ;;  %v10355_v46 = vmov 0.0  }
 0x1df   : > { %3785 = vst.msk [vmem:[#allocation2 + $0x30] sm:$0xff] %vm3777_vm2, %v10355_v46  ;;  %3778 = vst.msk [vmem:[#allocation2] sm:$0xff] %vm3777_vm2, %v10355_v46 }
 0x1e0   : > { %3779 = vst.msk [vmem:[#allocation2 + $0x8] sm:$0xff] %vm3777_vm2, %v10355_v46  ;;  %3780 = vst.msk [vmem:[#allocation2 + $0x10] sm:$0xff] %vm3777_vm2, %v10355_v46 }
 0x1e1   : > { %9223 = vmatmul.mubr.msk.f32.gmra.mrb[6].mxu0 %vm265_vm1, %v10632_v47  ;;  %3783 = vst.msk [vmem:[#allocation2 + $0x20] sm:$0xff] %vm3777_vm2, %v10355_v46  ;;  %3784 = vst.msk [vmem:[#allocation2 + $0x28] sm:$0xff] %vm3777_vm2, %v10355_v46  ;;  %v7968_v47 = vld [vmem:[%s12404_s3 + $0x20] sm:$0xff] }
 0x1e2   : > { %9225 = vmatprep.mubr.msk.f32.mxu0 %vm265_vm1, %v10635_v48  ;;  %3787 = vst.msk [vmem:[#allocation2 + $0x40] sm:$0xff] %vm3777_vm2, %v10355_v46  ;;  %3788 = vst.msk [vmem:[#allocation2 + $0x48] sm:$0xff] %vm3777_vm2, %v10355_v46  ;;  %9311 = vmatprep.subr.mxu1 %v7968_v47  ;;  %v4278_v48 = vld [vmem:[%s12404_s3] sm:$0xff] }
 0x1e3   : > { %3789 = vst.msk [vmem:[#allocation2 + $0x50] sm:$0xff] %vm3777_vm2, %v10355_v46  ;;  %3791 = vst.msk [vmem:[#allocation2 + $0x60] sm:$0xff] %vm3777_vm2, %v10355_v46  ;;  %9312 = vmatpush3.msra.mxu1 %v7968_v47 }
 0x1e4   : > { %3792 = vst.msk [vmem:[#allocation2 + $0x68] sm:$0xff] %vm3777_vm2, %v10355_v46  ;;  %3793 = vst.msk [vmem:[#allocation2 + $0x70] sm:$0xff] %vm3777_vm2, %v10355_v46  ;;  %9361 = vmatprep.subr.mxu1 %v4278_v48 }
 0x1e5   : > { %9226 = vmatmul.mubr.msk.f32.gmra.mrb[8].mxu0 %vm265_vm1, %v10642_v49  ;;  %3795 = vst.msk [vmem:[#allocation2 + $0x80] sm:$0xff] %vm3777_vm2, %v10355_v46  ;;  %3796 = vst.msk [vmem:[#allocation2 + $0x88] sm:$0xff] %vm3777_vm2, %v10355_v46  ;;  %v11476_v49 = vld [vmem:[%s12403_s2] ss:$0 sm:$0xff] }
 0x1e6   : > { %9228 = vmatprep.mubr.msk.f32.mxu0 %vm265_vm1, %v10645_v50  ;;  %3797 = vst.msk [vmem:[#allocation2 + $0x90] sm:$0xff] %vm3777_vm2, %v10355_v46  ;;  %3799 = vst.msk [vmem:[#allocation2 + $0xa0] sm:$0xff] %vm3777_vm2, %v10355_v46 }
 0x1e7   : > { %3800 = vst.msk [vmem:[#allocation2 + $0xa8] sm:$0xff] %vm3777_vm2, %v10355_v46  ;;  %3801 = vst.msk [vmem:[#allocation2 + $0xb0] sm:$0xff] %vm3777_vm2, %v10355_v46 }
 0x1e8   : > { %3803 = vst.msk [vmem:[#allocation2 + $0xc0] sm:$0xff] %vm3777_vm2, %v10355_v46  ;;  %3804 = vst.msk [vmem:[#allocation2 + $0xc8] sm:$0xff] %vm3777_vm2, %v10355_v46 }
 0x1e9   : > { %9229 = vmatmul.mubr.msk.f32.gmra.mrb[10].mxu0 %vm265_vm1, %v10652_v51  ;;  %3805 = vst.msk [vmem:[#allocation2 + $0xd0] sm:$0xff] %vm3777_vm2, %v10355_v46  ;;  %3807 = vst.msk [vmem:[#allocation2 + $0xe0] sm:$0xff] %vm3777_vm2, %v10355_v46 }
 0x1ea   : > { %9231 = vmatprep.mubr.msk.f32.mxu0 %vm265_vm1, %v10655_v52  ;;  %3808 = vst.msk [vmem:[#allocation2 + $0xe8] sm:$0xff] %vm3777_vm2, %v10355_v46  ;;  %3809 = vst.msk [vmem:[#allocation2 + $0xf0] sm:$0xff] %vm3777_vm2, %v10355_v46 }
 0x1eb   : > { %3811 = vst.msk [vmem:[#allocation2 + $0x100] sm:$0xff] %vm3777_vm2, %v10355_v46  ;;  %3812 = vst.msk [vmem:[#allocation2 + $0x108] sm:$0xff] %vm3777_vm2, %v10355_v46 }
 0x1ec   : > { %3813 = vst.msk [vmem:[#allocation2 + $0x110] sm:$0xff] %vm3777_vm2, %v10355_v46  ;;  %3815 = vst.msk [vmem:[#allocation2 + $0x120] sm:$0xff] %vm3777_vm2, %v10355_v46 }
 0x1ed   : > { %9232 = vmatmul.mubr.msk.f32.gmra.mrb[12].mxu0 %vm265_vm1, %v10662_v53  ;;  %3816 = vst.msk [vmem:[#allocation2 + $0x128] sm:$0xff] %vm3777_vm2, %v10355_v46  ;;  %3817 = vst.msk [vmem:[#allocation2 + $0x130] sm:$0xff] %vm3777_vm2, %v10355_v46 }
 0x1ee   : > { %9234 = vmatprep.mubr.msk.f32.mxu0 %vm265_vm1, %v10665_v54  ;;  %3819 = vst.msk [vmem:[#allocation2 + $0x140] sm:$0xff] %vm3777_vm2, %v10355_v46  ;;  %3820 = vst.msk [vmem:[#allocation2 + $0x148] sm:$0xff] %vm3777_vm2, %v10355_v46 }
 0x1ef   : > { %3821 = vst.msk [vmem:[#allocation2 + $0x150] sm:$0xff] %vm3777_vm2, %v10355_v46  ;;  %3823 = vst.msk [vmem:[#allocation2 + $0x160] sm:$0xff] %vm3777_vm2, %v10355_v46 }
 0x1f0   : > { %3824 = vst.msk [vmem:[#allocation2 + $0x168] sm:$0xff] %vm3777_vm2, %v10355_v46  ;;  %3825 = vst.msk [vmem:[#allocation2 + $0x170] sm:$0xff] %vm3777_vm2, %v10355_v46 }
 0x1f1   : > { %9235 = vmatmul.mubr.msk.f32.gmra.mrb[14].mxu0 %vm265_vm1, %v10672_v55  ;;  %3827 = vst.msk [vmem:[#allocation2 + $0x180] sm:$0xff] %vm3777_vm2, %v10355_v46  ;;  %3828 = vst.msk [vmem:[#allocation2 + $0x188] sm:$0xff] %vm3777_vm2, %v10355_v46 }
 0x1f2   : > { %9237 = vmatprep.mubr.msk.f32.mxu0 %vm265_vm1, %v10675_v56  ;;  %3829 = vst.msk [vmem:[#allocation2 + $0x190] sm:$0xff] %vm3777_vm2, %v10355_v46  ;;  %3831 = vst.msk [vmem:[#allocation2 + $0x1a0] sm:$0xff] %vm3777_vm2, %v10355_v46 }
 0x1f3   : > { %3832 = vst.msk [vmem:[#allocation2 + $0x1a8] sm:$0xff] %vm3777_vm2, %v10355_v46  ;;  %3833 = vst.msk [vmem:[#allocation2 + $0x1b0] sm:$0xff] %vm3777_vm2, %v10355_v46 }
 0x1f4   : > { %3835 = vst.msk [vmem:[#allocation2 + $0x1c0] sm:$0xff] %vm3777_vm2, %v10355_v46  ;;  %3836 = vst.msk [vmem:[#allocation2 + $0x1c8] sm:$0xff] %vm3777_vm2, %v10355_v46 }
 0x1f5   : > { %9238 = vmatmul.mubr.msk.f32.gmra.mrb[16].mxu0 %vm265_vm1, %v10682_v57  ;;  %3837 = vst.msk [vmem:[#allocation2 + $0x1d0] sm:$0xff] %vm3777_vm2, %v10355_v46  ;;  %3839 = vst.msk [vmem:[#allocation2 + $0x1e0] sm:$0xff] %vm3777_vm2, %v10355_v46 }
 0x1f6   : > { %9240 = vmatprep.mubr.msk.f32.mxu0 %vm265_vm1, %v10685_v58  ;;  %3840 = vst.msk [vmem:[#allocation2 + $0x1e8] sm:$0xff] %vm3777_vm2, %v10355_v46  ;;  %3841 = vst.msk [vmem:[#allocation2 + $0x1f0] sm:$0xff] %vm3777_vm2, %v10355_v46 }
 0x1f7   : > { %3843 = vst.msk [vmem:[#allocation2 + $0x200] sm:$0xff] %vm3777_vm2, %v10355_v46  ;;  %3844 = vst.msk [vmem:[#allocation2 + $0x208] sm:$0xff] %vm3777_vm2, %v10355_v46 }
 0x1f8   : > { %3845 = vst.msk [vmem:[#allocation2 + $0x210] sm:$0xff] %vm3777_vm2, %v10355_v46  ;;  %3847 = vst.msk [vmem:[#allocation2 + $0x220] sm:$0xff] %vm3777_vm2, %v10355_v46 }
 0x1f9   : > { %9241 = vmatmul.mubr.msk.f32.gmra.mrb[18].mxu0 %vm265_vm1, %v10692_v59  ;;  %3848 = vst.msk [vmem:[#allocation2 + $0x228] sm:$0xff] %vm3777_vm2, %v10355_v46  ;;  %3849 = vst.msk [vmem:[#allocation2 + $0x230] sm:$0xff] %vm3777_vm2, %v10355_v46 }
 0x1fa   : > { %9243 = vmatprep.mubr.msk.f32.mxu0 %vm265_vm1, %v12559_v9  ;;  %3782 = vst.msk [vmem:[#allocation2 + $0x18] sm:$0x1] %vm3781_vm3, %v10355_v46  ;;  %3786 = vst.msk [vmem:[#allocation2 + $0x38] sm:$0x1] %vm3781_vm3, %v10355_v46 }
 0x1fb   : > { %3790 = vst.msk [vmem:[#allocation2 + $0x58] sm:$0x1] %vm3781_vm3, %v10355_v46  ;;  %3794 = vst.msk [vmem:[#allocation2 + $0x78] sm:$0x1] %vm3781_vm3, %v10355_v46 }
 0x1fc   : > { %3798 = vst.msk [vmem:[#allocation2 + $0x98] sm:$0x1] %vm3781_vm3, %v10355_v46  ;;  %3802 = vst.msk [vmem:[#allocation2 + $0xb8] sm:$0x1] %vm3781_vm3, %v10355_v46 }
 0x1fd   : > { %9244 = vmatmul.mubr.msk.f32.gmra.mrb[20].mxu0 %vm265_vm1, %v12560_v10  ;;  %3806 = vst.msk [vmem:[#allocation2 + $0xd8] sm:$0x1] %vm3781_vm3, %v10355_v46  ;;  %3810 = vst.msk [vmem:[#allocation2 + $0xf8] sm:$0x1] %vm3781_vm3, %v10355_v46 }
 0x1fe   : > { %9246 = vmatprep.mubr.msk.f32.mxu0 %vm265_vm1, %v12561_v11  ;;  %3814 = vst.msk [vmem:[#allocation2 + $0x118] sm:$0x1] %vm3781_vm3, %v10355_v46  ;;  %3818 = vst.msk [vmem:[#allocation2 + $0x138] sm:$0x1] %vm3781_vm3, %v10355_v46 }
 0x1ff   : > { %3822 = vst.msk [vmem:[#allocation2 + $0x158] sm:$0x1] %vm3781_vm3, %v10355_v46  ;;  %3826 = vst.msk [vmem:[#allocation2 + $0x178] sm:$0x1] %vm3781_vm3, %v10355_v46 }
 0x200   : > { %3830 = vst.msk [vmem:[#allocation2 + $0x198] sm:$0x1] %vm3781_vm3, %v10355_v46  ;;  %3834 = vst.msk [vmem:[#allocation2 + $0x1b8] sm:$0x1] %vm3781_vm3, %v10355_v46 }
 0x201   : > { %9247 = vmatmul.mubr.msk.f32.gmra.mrb[22].mxu0 %vm265_vm1, %v12562_v12  ;;  %3838 = vst.msk [vmem:[#allocation2 + $0x1d8] sm:$0x1] %vm3781_vm3, %v10355_v46  ;;  %3842 = vst.msk [vmem:[#allocation2 + $0x1f8] sm:$0x1] %vm3781_vm3, %v10355_v46 }
 0x202   : > { %9249 = vmatprep.mubr.msk.f32.mxu0 %vm265_vm1, %v12563_v13  ;;  %3846 = vst.msk [vmem:[#allocation2 + $0x218] sm:$0x1] %vm3781_vm3, %v10355_v46  ;;  %3850 = vst.msk [vmem:[#allocation2 + $0x238] sm:$0x1] %vm3781_vm3, %v10355_v46 }
 0x205   : > { %9250 = vmatmul.mubr.msk.f32.gmra.mrb[24].mxu0 %vm265_vm1, %v12564_v14 }
 0x206   : > { %9252 = vmatprep.mubr.msk.f32.mxu0 %vm265_vm1, %v12565_v15 }
 0x209   : > { %9253 = vmatmul.mubr.msk.f32.gmra.mrb[26].mxu0 %vm265_vm1, %v12566_v16 }
 0x20a   : > { %9255 = vmatprep.mubr.msk.f32.mxu0 %vm265_vm1, %v12567_v17 }
 0x20d   : > { %9256 = vmatmul.mubr.msk.f32.gmra.mrb[28].mxu0 %vm265_vm1, %v12568_v19 }
 0x20e   : > { %9258 = vmatprep.mubr.msk.f32.mxu0 %vm265_vm1, %v7865_v18 }
 0x211   : > { %9259 = vmatmul.mubr.msk.f32.gmra.mrb[30].mxu0 %vm265_vm1, %v7866_v20 }
 0x212   : > { %9263 = vmatprep.mubr.msk.f32.mxu0 %vm265_vm1, %v12569_v21 }
 0x215   : > { %9264 = vmatmul.mubr.msk.f32.vlgmr.msra.gmra.mrb[0].mxu0 %vm265_vm1, %v12570_v22 }
 0x216   : > { %9266 = vmatprep.mubr.msk.f32.mxu0 %vm265_vm1, %v12571_v23 }
 0x219   : > { %9267 = vmatmul.mubr.msk.f32.gmra.mrb[2].mxu0 %vm265_vm1, %v12572_v24 }
 0x21a   : > { %9269 = vmatprep.mubr.msk.f32.mxu0 %vm265_vm1, %v12573_v25 }
 0x21d   : > { %9270 = vmatmul.mubr.msk.f32.gmra.mrb[4].mxu0 %vm265_vm1, %v12541_v37 }
 0x21e   : > { %9272 = vmatprep.mubr.msk.f32.mxu0 %vm265_vm1, %v12574_v26 }
 0x221   : > { %9273 = vmatmul.mubr.msk.f32.gmra.mrb[6].mxu0 %vm265_vm1, %v12575_v27 }
 0x222   : > { %9275 = vmatprep.mubr.msk.f32.mxu0 %vm265_vm1, %v12576_v28 }
 0x225   : > { %9276 = vmatmul.mubr.msk.f32.gmra.mrb[8].mxu0 %vm265_vm1, %v12577_v29 }
 0x226   : > { %9278 = vmatprep.mubr.msk.f32.mxu0 %vm265_vm1, %v12578_v30 }
 0x229   : > { %9279 = vmatmul.mubr.msk.f32.gmra.mrb[10].mxu0 %vm265_vm1, %v12579_v31 }
 0x22a   : > { %9281 = vmatprep.mubr.msk.f32.mxu0 %vm265_vm1, %v12580_v32 }
 0x22d   : > { %9282 = vmatmul.mubr.msk.f32.gmra.mrb[12].mxu0 %vm265_vm1, %v12581_v33 }
 0x22e   : > { %9284 = vmatprep.mubr.msk.f32.mxu0 %vm265_vm1, %v12582_v34 }
 0x231   : > { %9285 = vmatmul.mubr.msk.f32.gmra.mrb[14].mxu0 %vm265_vm1, %v12551_v61 }
 0x232   : > { %9287 = vmatprep.mubr.msk.f32.mxu0 %vm265_vm1, %v12583_v40 }
 0x235   : > { %9288 = vmatmul.mubr.msk.f32.gmra.mrb[16].mxu0 %vm265_vm1, %v12553_v62 }
 0x236   : > { %9290 = vmatprep.mubr.msk.f32.mxu0 %vm265_vm1, %v12554_v0 }
 0x239   : > { %9291 = vmatmul.mubr.msk.f32.gmra.mrb[18].mxu0 %vm265_vm1, %v12584_v41 }
 0x23a   : > { %9293 = vmatprep.mubr.msk.f32.mxu0 %vm265_vm1, %v12556_v1 }
 0x23d   : > { %9294 = vmatmul.mubr.msk.f32.gmra.mrb[20].mxu0 %vm265_vm1, %v10865_v2 }
 0x23e   : > { %9296 = vmatprep.mubr.msk.f32.mxu0 %vm265_vm1, %v12585_v42 }
 0x241   : > { %9297 = vmatmul.mubr.msk.f32.gmra.mrb[22].mxu0 %vm265_vm1, %v10875_v5 }
 0x242   : > { %9299 = vmatprep.mubr.msk.f32.mxu0 %vm265_vm1, %v12558_v3 }
 0x245   : > { %9300 = vmatmul.mubr.msk.f32.gmra.mrb[24].mxu0 %vm265_vm1, %v10885_v38 }
 0x246   : > { %9302 = vmatprep.mubr.msk.f32.mxu0 %vm265_vm1, %v12586_v43 }
 0x249   : > { %9303 = vmatmul.mubr.msk.f32.gmra.mrb[26].mxu0 %vm265_vm1, %v10895_v36 }
 0x24a   : > { %9305 = vmatprep.mubr.msk.f32.mxu0 %vm265_vm1, %v11114_v63 }
 0x24d   : > { %9306 = vmatmul.mubr.msk.f32.gmra.mrb[28].mxu0 %vm265_vm1, %v11121_v60  ;;  %v11488_v60 = vld [vmem:[%s12404_s3 + $0x8] sm:$0xff] }
 0x24e   : > { %9308 = vmatprep.mubr.msk.f32.mxu0 %vm265_vm1, %v7931_v44 }
 0x251   : > { %9309 = vmatmul.mubr.msk.f32.gmra.mrb[30].mxu0 %vm265_vm1, %v7932_v45 }
 0x2e8   : > { %v9265_v50 = vpop.f32.mrb[0].mxu0 }
 0x2e9   : > { %v9761_v51 = vadd.f32 %v9265_v50, %v11476_v49  ;;  %v3554_v52 = vpop.f32.mrb[1].mxu0 }
 0x2ea   : > { %v9762_v53 = vadd.f32 %v11476_v49, %v3554_v52 }
 0x2eb   : > { %v3746_v54 = vmax.f32 %v9761_v51, 0.0 }
 0x2ec   : > { %v3745_v55 = vmax.f32 %v9762_v53, 0.0  ;;  %v9268_v56 = vpop.f32.mrb[2].mxu0 }
 0x2ed   : > { %3853 = vst.msk [vmem:[#allocation2 + $0x30] sm:$0xff] %vm3777_vm2, %v3746_v54  ;;  %v9763_v57 = vadd.f32 %v9268_v56, %v11476_v49  ;;  %v3564_v58 = vpop.f32.mrb[3].mxu0 }
 0x2ee   : > { %3852 = vst.msk [vmem:[#allocation2 + $0x28] sm:$0xff] %vm3777_vm2, %v3745_v55  ;;  %v9764_v59 = vadd.f32 %v11476_v49, %v3564_v58  ;;  %9313 = vmatprep.mubr.msk.f32.mxu1 %vm3777_vm2, %v3745_v55 }
 0x2ef   : > { %v3748_v61 = vmax.f32 %v9763_v57, 0.0  ;;  %9314 = vmatmul.mubr.msk.f32.vlgmr.msra.gmra.mrb[0].mxu1 %vm3777_vm2, %v3746_v54 }
 0x2f0   : > { %v3747_v62 = vmax.f32 %v9764_v59, 0.0  ;;  %9362 = vmatpush3.msra.mxu1 %v4278_v48  ;;  %v9271_v63 = vpop.f32.mrb[4].mxu0 }
 0x2f1   : > { %3855 = vst.msk [vmem:[#allocation2 + $0x50] sm:$0xff] %vm3777_vm2, %v3748_v61  ;;  %v9765_v2 = vadd.f32 %v9271_v63, %v11476_v49  ;;  %v3574_v36 = vpop.f32.mrb[5].mxu0  ;;  %9411 = vmatprep.subr.mxu1 %v11488_v60 }
 0x2f2   : > { %3854 = vst.msk [vmem:[#allocation2 + $0x48] sm:$0xff] %vm3777_vm2, %v3747_v62  ;;  %v9766_v5 = vadd.f32 %v11476_v49, %v3574_v36  ;;  %9316 = vmatprep.mubr.msk.f32.mxu1 %vm3777_vm2, %v3747_v62 }
 0x2f3   : > { %v3750_v38 = vmax.f32 %v9765_v2, 0.0  ;;  %9317 = vmatmul.mubr.msk.f32.gmra.mrb[2].mxu1 %vm3777_vm2, %v3748_v61 }
 0x2f4   : > { %v3749_v35 = vmax.f32 %v9766_v5, 0.0  ;;  %v9274_v4 = vpop.f32.mrb[6].mxu0 }
 0x2f5   : > { %3857 = vst.msk [vmem:[#allocation2 + $0x70] sm:$0xff] %vm3777_vm2, %v3750_v38  ;;  %v9767_v6 = vadd.f32 %v9274_v4, %v11476_v49  ;;  %v3584_v39 = vpop.f32.mrb[7].mxu0 }
 0x2f6   : > { %3856 = vst.msk [vmem:[#allocation2 + $0x68] sm:$0xff] %vm3777_vm2, %v3749_v35  ;;  %v9768_v3 = vadd.f32 %v11476_v49, %v3584_v39  ;;  %9319 = vmatprep.mubr.msk.f32.mxu1 %vm3777_vm2, %v3749_v35 }
 0x2f7   : > { %v3752_v0 = vmax.f32 %v9767_v6, 0.0  ;;  %9320 = vmatmul.mubr.msk.f32.gmra.mrb[4].mxu1 %vm3777_vm2, %v3750_v38 }
 0x2f8   : > { %v3751_v37 = vmax.f32 %v9768_v3, 0.0  ;;  %v9277_v1 = vpop.f32.mrb[8].mxu0 }
 0x2f9   : > { %3859 = vst.msk [vmem:[#allocation2 + $0x90] sm:$0xff] %vm3777_vm2, %v3752_v0  ;;  %v9769_v7 = vadd.f32 %v9277_v1, %v11476_v49  ;;  %v3594_v8 = vpop.f32.mrb[9].mxu0 }
 0x2fa   : > { %3858 = vst.msk [vmem:[#allocation2 + $0x88] sm:$0xff] %vm3777_vm2, %v3751_v37  ;;  %v9770_v9 = vadd.f32 %v11476_v49, %v3594_v8  ;;  %9322 = vmatprep.mubr.msk.f32.mxu1 %vm3777_vm2, %v3751_v37 }
 0x2fb   : > { %v3754_v10 = vmax.f32 %v9769_v7, 0.0  ;;  %9323 = vmatmul.mubr.msk.f32.gmra.mrb[6].mxu1 %vm3777_vm2, %v3752_v0 }
 0x2fc   : > { %v3753_v11 = vmax.f32 %v9770_v9, 0.0  ;;  %v9280_v12 = vpop.f32.mrb[10].mxu0 }
 0x2fd   : > { %3861 = vst.msk [vmem:[#allocation2 + $0xb0] sm:$0xff] %vm3777_vm2, %v3754_v10  ;;  %v9771_v13 = vadd.f32 %v9280_v12, %v11476_v49  ;;  %v3604_v14 = vpop.f32.mrb[11].mxu0 }
 0x2fe   : > { %3860 = vst.msk [vmem:[#allocation2 + $0xa8] sm:$0xff] %vm3777_vm2, %v3753_v11  ;;  %v9772_v15 = vadd.f32 %v11476_v49, %v3604_v14  ;;  %9325 = vmatprep.mubr.msk.f32.mxu1 %vm3777_vm2, %v3753_v11 }
 0x2ff   : > { %v3756_v16 = vmax.f32 %v9771_v13, 0.0  ;;  %9326 = vmatmul.mubr.msk.f32.gmra.mrb[8].mxu1 %vm3777_vm2, %v3754_v10 }
 0x300   : > { %v3755_v17 = vmax.f32 %v9772_v15, 0.0  ;;  %v9283_v18 = vpop.f32.mrb[12].mxu0 }
 0x301   : > { %3863 = vst.msk [vmem:[#allocation2 + $0xd0] sm:$0xff] %vm3777_vm2, %v3756_v16  ;;  %v9773_v19 = vadd.f32 %v9283_v18, %v11476_v49  ;;  %v3614_v20 = vpop.f32.mrb[13].mxu0  ;;  %v11587_v18 = vld [vmem:[#allocation2 + $0x27] sm:$0xff] }
 0x302   : > { %3862 = vst.msk [vmem:[#allocation2 + $0xc8] sm:$0xff] %vm3777_vm2, %v3755_v17  ;;  %v9774_v21 = vadd.f32 %v11476_v49, %v3614_v20  ;;  %9328 = vmatprep.mubr.msk.f32.mxu1 %vm3777_vm2, %v3755_v17  ;;  %v4247_v17 = vld [vmem:[#allocation2 + $0xf] sm:$0xff]  ;;  %v11597_v20 = vld [vmem:[#allocation2 + $0x47] sm:$0xff] }
 0x303   : > { %v3758_v22 = vmax.f32 %v9773_v19, 0.0  ;;  %9329 = vmatmul.mubr.msk.f32.gmra.mrb[10].mxu1 %vm3777_vm2, %v3756_v16  ;;  %v4246_v16 = vld [vmem:[#allocation2 + $0x7] sm:$0xff]  ;;  %v11593_v19 = vld [vmem:[#allocation2 + $0x2f] sm:$0xff] }
 0x304   : > { %v3757_v23 = vmax.f32 %v9774_v21, 0.0  ;;  %v9286_v24 = vpop.f32.mrb[14].mxu0  ;;  %v11601_v21 = vld [vmem:[#allocation2 + $0x4f] sm:$0xff] }
 0x305   : > { %3865 = vst.msk [vmem:[#allocation2 + $0xf0] sm:$0xff] %vm3777_vm2, %v3758_v22  ;;  %v9775_v25 = vadd.f32 %v9286_v24, %v11476_v49  ;;  %v3624_v26 = vpop.f32.mrb[15].mxu0  ;;  %v11617_v24 = vld [vmem:[#allocation2 + $0x8f] sm:$0xff] }
 0x306   : > { %3864 = vst.msk [vmem:[#allocation2 + $0xe8] sm:$0xff] %vm3777_vm2, %v3757_v23  ;;  %v9776_v27 = vadd.f32 %v11476_v49, %v3624_v26  ;;  %9331 = vmatprep.mubr.msk.f32.mxu1 %vm3777_vm2, %v3757_v23  ;;  %v11613_v23 = vld [vmem:[#allocation2 + $0x87] sm:$0xff]  ;;  %v11625_v26 = vld [vmem:[#allocation2 + $0xaf] sm:$0xff] }
 0x307   : > { %v3760_v28 = vmax.f32 %v9775_v25, 0.0  ;;  %9332 = vmatmul.mubr.msk.f32.gmra.mrb[12].mxu1 %vm3777_vm2, %v3758_v22  ;;  %v11609_v22 = vld [vmem:[#allocation2 + $0x6f] sm:$0xff]  ;;  %v11621_v25 = vld [vmem:[#allocation2 + $0xa7] sm:$0xff] }
 0x308   : > { %v3759_v29 = vmax.f32 %v9776_v27, 0.0  ;;  %v9289_v30 = vpop.f32.mrb[16].mxu0 }
 0x309   : > { %3867 = vst.msk [vmem:[#allocation2 + $0x110] sm:$0xff] %vm3777_vm2, %v3760_v28  ;;  %v9777_v31 = vadd.f32 %v9289_v30, %v11476_v49  ;;  %v3634_v32 = vpop.f32.mrb[17].mxu0  ;;  %v11629_v27 = vld [vmem:[#allocation2 + $0xc7] sm:$0xff] }
 0x30a   : > { %3866 = vst.msk [vmem:[#allocation2 + $0x108] sm:$0xff] %vm3777_vm2, %v3759_v29  ;;  %v9778_v33 = vadd.f32 %v11476_v49, %v3634_v32  ;;  %9334 = vmatprep.mubr.msk.f32.mxu1 %vm3777_vm2, %v3759_v29 }
 0x30b   : > { %v3762_v34 = vmax.f32 %v9777_v31, 0.0  ;;  %9335 = vmatmul.mubr.msk.f32.gmra.mrb[14].mxu1 %vm3777_vm2, %v3760_v28  ;;  %v11633_v28 = vld [vmem:[#allocation2 + $0xcf] sm:$0xff] }
 0x30c   : > { %v3761_v40 = vmax.f32 %v9778_v33, 0.0  ;;  %v9292_v41 = vpop.f32.mrb[18].mxu0 }
 0x30d   : > { %3869 = vst.msk [vmem:[#allocation2 + $0x130] sm:$0xff] %vm3777_vm2, %v3762_v34  ;;  %v9779_v42 = vadd.f32 %v9292_v41, %v11476_v49  ;;  %v3644_v43 = vpop.f32.mrb[19].mxu0  ;;  %v11637_v29 = vld [vmem:[#allocation2 + $0xe7] sm:$0xff]  ;;  %v11641_v30 = vld [vmem:[#allocation2 + $0xef] sm:$0xff] }
 0x30e   : > { %3868 = vst.msk [vmem:[#allocation2 + $0x128] sm:$0xff] %vm3777_vm2, %v3761_v40  ;;  %v9780_v44 = vadd.f32 %v11476_v49, %v3644_v43  ;;  %9337 = vmatprep.mubr.msk.f32.mxu1 %vm3777_vm2, %v3761_v40 }
 0x30f   : > { %v3764_v45 = vmax.f32 %v9779_v42, 0.0  ;;  %9338 = vmatmul.mubr.msk.f32.gmra.mrb[16].mxu1 %vm3777_vm2, %v3762_v34 }
 0x310   : > { %v3763_v46 = vmax.f32 %v9780_v44, 0.0  ;;  %v9295_v47 = vpop.f32.mrb[20].mxu0 }
 0x311   : > { %3871 = vst.msk [vmem:[#allocation2 + $0x150] sm:$0xff] %vm3777_vm2, %v3764_v45  ;;  %v9781_v48 = vadd.f32 %v9295_v47, %v11476_v49  ;;  %v3654_v50 = vpop.f32.mrb[21].mxu0  ;;  %v11645_v31 = vld [vmem:[#allocation2 + $0x107] sm:$0xff]  ;;  %v11649_v32 = vld [vmem:[#allocation2 + $0x10f] sm:$0xff] }
 0x312   : > { %3870 = vst.msk [vmem:[#allocation2 + $0x148] sm:$0xff] %vm3777_vm2, %v3763_v46  ;;  %v9782_v51 = vadd.f32 %v11476_v49, %v3654_v50  ;;  %9340 = vmatprep.mubr.msk.f32.mxu1 %vm3777_vm2, %v3763_v46 }
 0x313   : > { %v3766_v52 = vmax.f32 %v9781_v48, 0.0  ;;  %9341 = vmatmul.mubr.msk.f32.gmra.mrb[18].mxu1 %vm3777_vm2, %v3764_v45 }
 0x314   : > { %v3765_v53 = vmax.f32 %v9782_v51, 0.0  ;;  %v9298_v54 = vpop.f32.mrb[22].mxu0 }
 0x315   : > { %3873 = vst.msk [vmem:[#allocation2 + $0x170] sm:$0xff] %vm3777_vm2, %v3766_v52  ;;  %v9783_v55 = vadd.f32 %v9298_v54, %v11476_v49  ;;  %v3664_v56 = vpop.f32.mrb[23].mxu0  ;;  %v11653_v33 = vld [vmem:[#allocation2 + $0x127] sm:$0xff]  ;;  %v11657_v34 = vld [vmem:[#allocation2 + $0x12f] sm:$0xff] }
 0x316   : > { %3872 = vst.msk [vmem:[#allocation2 + $0x168] sm:$0xff] %vm3777_vm2, %v3765_v53  ;;  %v9784_v57 = vadd.f32 %v11476_v49, %v3664_v56  ;;  %9343 = vmatprep.mubr.msk.f32.mxu1 %vm3777_vm2, %v3765_v53  ;;  %v4633_v54 = vld [vmem:[#allocation2 + $0x10] sm:$0xff]  ;;  %v4634_v56 = vld [vmem:[#allocation2 + $0x28] sm:$0xff] }
 0x317   : > { %v3768_v58 = vmax.f32 %v9783_v55, 0.0  ;;  %9344 = vmatmul.mubr.msk.f32.gmra.mrb[20].mxu1 %vm3777_vm2, %v3766_v52  ;;  %v4632_v52 = vld [vmem:[#allocation2 + $0x8] sm:$0xff]  ;;  %v11713_v55 = vld [vmem:[%s12404_s3 + $0x18] sm:$0xff] }
 0x318   : > { %v3767_v59 = vmax.f32 %v9784_v57, 0.0  ;;  %v9301_v61 = vpop.f32.mrb[24].mxu0  ;;  %v4635_v57 = vld [vmem:[#allocation2 + $0x30] sm:$0xff] }
 0x319   : > { %3875 = vst.msk [vmem:[#allocation2 + $0x190] sm:$0xff] %vm3777_vm2, %v3768_v58  ;;  %v9785_v62 = vadd.f32 %v9301_v61, %v11476_v49  ;;  %v3674_v63 = vpop.f32.mrb[25].mxu0  ;;  %v11661_v40 = vld [vmem:[#allocation2 + $0x147] sm:$0xff]  ;;  %v11665_v41 = vld [vmem:[#allocation2 + $0x14f] sm:$0xff] }
 0x31a   : > { %3874 = vst.msk [vmem:[#allocation2 + $0x188] sm:$0xff] %vm3777_vm2, %v3767_v59  ;;  %v9786_v2 = vadd.f32 %v11476_v49, %v3674_v63  ;;  %9346 = vmatprep.mubr.msk.f32.mxu1 %vm3777_vm2, %v3767_v59  ;;  %v11724_v59 = vld [vmem:[#allocation2 + $0x50] sm:$0xff]  ;;  %v11728_v61 = vld [vmem:[#allocation2 + $0x68] sm:$0xff] }
 0x31b   : > { %v3770_v36 = vmax.f32 %v9785_v62, 0.0  ;;  %9347 = vmatmul.mubr.msk.f32.gmra.mrb[22].mxu1 %vm3777_vm2, %v3768_v58  ;;  %v11720_v58 = vld [vmem:[#allocation2 + $0x48] sm:$0xff]  ;;  %12587 = vst [vmem:[#allocation11_spill] sm:$0xff] %v11728_v61  ;;  %v11732_v62 = vld [vmem:[#allocation2 + $0x70] sm:$0xff] }
 0x31c   : > { %v3769_v5 = vmax.f32 %v9786_v2, 0.0  ;;  %v9304_v38 = vpop.f32.mrb[26].mxu0  ;;  %12588 = vst [vmem:[#allocation12_spill] sm:$0xff] %v11732_v62  ;;  %v11736_v63 = vld [vmem:[#allocation2 + $0x88] sm:$0xff]  ;;  %v11740_v2 = vld [vmem:[#allocation2 + $0x90] sm:$0xff] }
 0x31d   : > { %3877 = vst.msk [vmem:[#allocation2 + $0x1b0] sm:$0xff] %vm3777_vm2, %v3770_v36  ;;  %v9787_v35 = vadd.f32 %v9304_v38, %v11476_v49  ;;  %v3684_v4 = vpop.f32.mrb[27].mxu0  ;;  %v11669_v42 = vld [vmem:[#allocation2 + $0x167] sm:$0xff]  ;;  %v11673_v43 = vld [vmem:[#allocation2 + $0x16f] sm:$0xff]  ;;  %12589 = vst [vmem:[#allocation18_spill] sm:$0xff] %v11736_v63 }
 0x31e   : > { %3876 = vst.msk [vmem:[#allocation2 + $0x1a8] sm:$0xff] %vm3777_vm2, %v3769_v5  ;;  %v9788_v6 = vadd.f32 %v11476_v49, %v3684_v4  ;;  %9349 = vmatprep.mubr.msk.f32.mxu1 %vm3777_vm2, %v3769_v5  ;;  %12590 = vst [vmem:[#allocation28_spill] sm:$0xff] %v11740_v2  ;;  %v11748_v5 = vld [vmem:[#allocation2 + $0xb0] sm:$0xff]  ;;  %v11752_v38 = vld [vmem:[#allocation2 + $0xc8] sm:$0xff] }
 0x31f   : > { %v3772_v39 = vmax.f32 %v9787_v35, 0.0  ;;  %9350 = vmatmul.mubr.msk.f32.gmra.mrb[24].mxu1 %vm3777_vm2, %v3770_v36  ;;  %v11744_v36 = vld [vmem:[#allocation2 + $0xa8] sm:$0xff]  ;;  %12592 = vst [vmem:[#allocation31_spill] sm:$0xff] %v11748_v5  ;;  %12593 = vst [vmem:[#allocation33_spill] sm:$0xff] %v11752_v38  ;;  %v11756_v35 = vld [vmem:[#allocation2 + $0xd0] sm:$0xff] }
 0x320   : > { %v3771_v3 = vmax.f32 %v9788_v6, 0.0  ;;  %v9307_v0 = vpop.f32.mrb[28].mxu0  ;;  %12591 = vst [vmem:[#allocation30_spill] sm:$0xff] %v11744_v36  ;;  %12594 = vst [vmem:[#allocation35_spill] sm:$0xff] %v11756_v35  ;;  %v11760_v4 = vld [vmem:[#allocation2 + $0xe8] sm:$0xff]  ;;  %v11764_v6 = vld [vmem:[#allocation2 + $0xf0] sm:$0xff] }
 0x321   : > { %3879 = vst.msk [vmem:[#allocation2 + $0x1d0] sm:$0xff] %vm3777_vm2, %v3772_v39  ;;  %v9789_v37 = vadd.f32 %v9307_v0, %v11476_v49  ;;  %v3694_v1 = vpop.f32.mrb[29].mxu0  ;;  %v11677_v44 = vld [vmem:[#allocation2 + $0x187] sm:$0xff]  ;;  %v11681_v45 = vld [vmem:[#allocation2 + $0x18f] sm:$0xff]  ;;  %12595 = vst [vmem:[#allocation3_spill] sm:$0xff] %v11760_v4 }
 0x322   : > { %3878 = vst.msk [vmem:[#allocation2 + $0x1c8] sm:$0xff] %vm3777_vm2, %v3771_v3  ;;  %v9790_v7 = vadd.f32 %v11476_v49, %v3694_v1  ;;  %9352 = vmatprep.mubr.msk.f32.mxu1 %vm3777_vm2, %v3771_v3  ;;  %12596 = vst [vmem:[#allocation4_spill] sm:$0xff] %v11764_v6  ;;  %v11772_v3 = vld [vmem:[#allocation2 + $0x110] sm:$0xff]  ;;  %v11776_v0 = vld [vmem:[#allocation2 + $0x128] sm:$0xff] }
 0x323   : > { %v3774_v8 = vmax.f32 %v9789_v37, 0.0  ;;  %9353 = vmatmul.mubr.msk.f32.gmra.mrb[26].mxu1 %vm3777_vm2, %v3772_v39  ;;  %v11768_v39 = vld [vmem:[#allocation2 + $0x108] sm:$0xff]  ;;  %12598 = vst [vmem:[#allocation6_spill] sm:$0xff] %v11772_v3  ;;  %12599 = vst [vmem:[#allocation7_spill] sm:$0xff] %v11776_v0  ;;  %v11780_v37 = vld [vmem:[#allocation2 + $0x130] sm:$0xff] }
 0x324   : > { %v3773_v9 = vmax.f32 %v9790_v7, 0.0  ;;  %v9310_v10 = vpop.f32.mrb[30].mxu0  ;;  %12597 = vst [vmem:[#allocation5_spill] sm:$0xff] %v11768_v39  ;;  %12600 = vst [vmem:[#allocation8_spill] sm:$0xff] %v11780_v37  ;;  %v11784_v1 = vld [vmem:[#allocation2 + $0x148] sm:$0xff]  ;;  %v11788_v7 = vld [vmem:[#allocation2 + $0x150] sm:$0xff] }
 0x325   : > { %3881 = vst.msk [vmem:[#allocation2 + $0x1f0] sm:$0xff] %vm3777_vm2, %v3774_v8  ;;  %v9791_v11 = vadd.f32 %v9310_v10, %v11476_v49  ;;  %v3704_v12 = vpop.f32.mrb[31].mxu0  ;;  %v11685_v46 = vld [vmem:[#allocation2 + $0x1a7] sm:$0xff]  ;;  %v11689_v47 = vld [vmem:[#allocation2 + $0x1af] sm:$0xff]  ;;  %12601 = vst [vmem:[#allocation9_spill] sm:$0xff] %v11784_v1 }
 0x326   : > { %3880 = vst.msk [vmem:[#allocation2 + $0x1e8] sm:$0xff] %vm3777_vm2, %v3773_v9  ;;  %v9792_v13 = vadd.f32 %v11476_v49, %v3704_v12  ;;  %9355 = vmatprep.mubr.msk.f32.mxu1 %vm3777_vm2, %v3773_v9  ;;  %v11584_v49 = vld [vmem:[%s12404_s3 + $0x10] sm:$0xff]  ;;  %12602 = vst [vmem:[#allocation10_spill] sm:$0xff] %v11788_v7  ;;  %v11800_v10 = vld [vmem:[#allocation2 + $0x188] sm:$0xff] }
 0x327   : > { %v3776_v14 = vmax.f32 %v9791_v11, 0.0  ;;  %9356 = vmatmul.mubr.msk.f32.gmra.mrb[28].mxu1 %vm3777_vm2, %v3774_v8  ;;  %v11792_v8 = vld [vmem:[#allocation2 + $0x168] sm:$0xff]  ;;  %v11796_v9 = vld [vmem:[#allocation2 + $0x170] sm:$0xff]  ;;  %12605 = vst [vmem:[#allocation13_spill] sm:$0xff] %v11800_v10 }
 0x328   : > { %v3775_v15 = vmax.f32 %v9792_v13, 0.0  ;;  %12603 = vst [vmem:[#allocation37_spill] sm:$0xff] %v11792_v8  ;;  %12604 = vst [vmem:[#allocation38_spill] sm:$0xff] %v11796_v9  ;;  %v11804_v11 = vld [vmem:[#allocation2 + $0x190] sm:$0xff]  ;;  %v11808_v12 = vld [vmem:[#allocation2 + $0x1a8] sm:$0xff] }
 0x329   : > { %3883 = vst.msk [vmem:[#allocation2 + $0x210] sm:$0xff] %vm3777_vm2, %v3776_v14  ;;  %v11693_v48 = vld [vmem:[#allocation2 + $0x1c7] sm:$0xff]  ;;  %v11697_v50 = vld [vmem:[#allocation2 + $0x1cf] sm:$0xff]  ;;  %12606 = vst [vmem:[#allocation14_spill] sm:$0xff] %v11804_v11 }
 0x32a   : > { %3882 = vst.msk [vmem:[#allocation2 + $0x208] sm:$0xff] %vm3777_vm2, %v3775_v15  ;;  %9358 = vmatprep.mubr.msk.f32.mxu1 %vm3777_vm2, %v3775_v15  ;;  %12607 = vst [vmem:[#allocation15_spill] sm:$0xff] %v11808_v12  ;;  %v11812_v13 = vld [vmem:[#allocation2 + $0x1b0] sm:$0xff] }
 0x32b   : > { %9359 = vmatmul.mubr.msk.f32.gmra.mrb[30].mxu1 %vm3777_vm2, %v3776_v14  ;;  %12608 = vst [vmem:[#allocation16_spill] sm:$0xff] %v11812_v13  ;;  %v11816_v14 = vld [vmem:[#allocation2 + $0x1c8] sm:$0xff]  ;;  %v11820_v15 = vld [vmem:[#allocation2 + $0x1d0] sm:$0xff] }
 0x32c   : > { %9363 = vmatprep.mubr.msk.f32.mxu1 %vm3777_vm2, %v4246_v16  ;;  %12609 = vst [vmem:[#allocation17_spill] sm:$0xff] %v11816_v14  ;;  %12610 = vst [vmem:[#allocation19_spill] sm:$0xff] %v11820_v15 }
 0x32d   : > { %v11701_v51 = vld [vmem:[#allocation2 + $0x1e7] sm:$0xff]  ;;  %v11705_v53 = vld [vmem:[#allocation2 + $0x1ef] sm:$0xff] }
 0x32e   : > { %v11824_v16 = vld [vmem:[#allocation2 + $0x1e8] sm:$0xff] }
 0x32f   : > { %9364 = vmatmul.mubr.msk.f32.vlgmr.msra.gmra.mrb[0].mxu1 %vm3777_vm2, %v4247_v17  ;;  %12611 = vst [vmem:[#allocation20_spill] sm:$0xff] %v11824_v16  ;;  %v5019_v17 = vld [vmem:[#allocation2 + $0x9] sm:$0xff] }
 0x330   : > { %9412 = vmatpush3.msra.mxu1 %v11488_v60  ;;  %9366 = vmatprep.mubr.msk.f32.mxu1 %vm3777_vm2, %v11587_v18  ;;  %v11605_v60 = vld [vmem:[#allocation2 + $0x67] sm:$0xff] }
 0x331   : > { %9461 = vmatprep.subr.mxu1 %v11584_v49 }
 0x333   : > { %9367 = vmatmul.mubr.msk.f32.gmra.mrb[2].mxu1 %vm3777_vm2, %v11593_v19 }
 0x334   : > { %9369 = vmatprep.mubr.msk.f32.mxu1 %vm3777_vm2, %v11597_v20 }
 0x337   : > { %9370 = vmatmul.mubr.msk.f32.gmra.mrb[4].mxu1 %vm3777_vm2, %v11601_v21 }
 0x338   : > { %9372 = vmatprep.mubr.msk.f32.mxu1 %vm3777_vm2, %v11605_v60 }
 0x33b   : > { %9373 = vmatmul.mubr.msk.f32.gmra.mrb[6].mxu1 %vm3777_vm2, %v11609_v22 }
 0x33c   : > { %9375 = vmatprep.mubr.msk.f32.mxu1 %vm3777_vm2, %v11613_v23 }
 0x33f   : > { %9376 = vmatmul.mubr.msk.f32.gmra.mrb[8].mxu1 %vm3777_vm2, %v11617_v24 }
 0x340   : > { %9378 = vmatprep.mubr.msk.f32.mxu1 %vm3777_vm2, %v11621_v25 }
 0x343   : > { %9379 = vmatmul.mubr.msk.f32.gmra.mrb[10].mxu1 %vm3777_vm2, %v11625_v26 }
 0x344   : > { %9381 = vmatprep.mubr.msk.f32.mxu1 %vm3777_vm2, %v11629_v27 }
 0x347   : > { %9382 = vmatmul.mubr.msk.f32.gmra.mrb[12].mxu1 %vm3777_vm2, %v11633_v28 }
 0x348   : > { %9384 = vmatprep.mubr.msk.f32.mxu1 %vm3777_vm2, %v11637_v29 }
 0x34b   : > { %9385 = vmatmul.mubr.msk.f32.gmra.mrb[14].mxu1 %vm3777_vm2, %v11641_v30 }
 0x34c   : > { %9387 = vmatprep.mubr.msk.f32.mxu1 %vm3777_vm2, %v11645_v31 }
 0x34f   : > { %9388 = vmatmul.mubr.msk.f32.gmra.mrb[16].mxu1 %vm3777_vm2, %v11649_v32 }
 0x350   : > { %9390 = vmatprep.mubr.msk.f32.mxu1 %vm3777_vm2, %v11653_v33 }
 0x353   : > { %9391 = vmatmul.mubr.msk.f32.gmra.mrb[18].mxu1 %vm3777_vm2, %v11657_v34 }
 0x354   : > { %9393 = vmatprep.mubr.msk.f32.mxu1 %vm3777_vm2, %v11661_v40 }
 0x357   : > { %9394 = vmatmul.mubr.msk.f32.gmra.mrb[20].mxu1 %vm3777_vm2, %v11665_v41 }
 0x358   : > { %9396 = vmatprep.mubr.msk.f32.mxu1 %vm3777_vm2, %v11669_v42 }
 0x35b   : > { %9397 = vmatmul.mubr.msk.f32.gmra.mrb[22].mxu1 %vm3777_vm2, %v11673_v43 }
 0x35c   : > { %9399 = vmatprep.mubr.msk.f32.mxu1 %vm3777_vm2, %v11677_v44 }
 0x35f   : > { %9400 = vmatmul.mubr.msk.f32.gmra.mrb[24].mxu1 %vm3777_vm2, %v11681_v45 }
 0x360   : > { %9402 = vmatprep.mubr.msk.f32.mxu1 %vm3777_vm2, %v11685_v46 }
 0x363   : > { %9403 = vmatmul.mubr.msk.f32.gmra.mrb[26].mxu1 %vm3777_vm2, %v11689_v47 }
 0x364   : > { %9405 = vmatprep.mubr.msk.f32.mxu1 %vm3777_vm2, %v11693_v48 }
 0x367   : > { %9406 = vmatmul.mubr.msk.f32.gmra.mrb[28].mxu1 %vm3777_vm2, %v11697_v50 }
 0x368   : > { %9408 = vmatprep.mubr.msk.f32.mxu1 %vm3777_vm2, %v11701_v51 }
 0x36b   : > { %9409 = vmatmul.mubr.msk.f32.gmra.mrb[30].mxu1 %vm3777_vm2, %v11705_v53 }
 0x36c   : > { %9413 = vmatprep.mubr.msk.f32.mxu1 %vm3777_vm2, %v4632_v52  ;;  %v5020_v52 = vld [vmem:[#allocation2 + $0x11] sm:$0xff] }
 0x36f   : > { %9414 = vmatmul.mubr.msk.f32.vlgmr.msra.gmra.mrb[0].mxu1 %vm3777_vm2, %v4633_v54  ;;  %v11836_v54 = vld [vmem:[%s12404_s3 + $0x28] sm:$0xff] }
 0x370   : > { %9462 = vmatpush3.msra.mxu1 %v11584_v49  ;;  %9416 = vmatprep.mubr.msk.f32.mxu1 %vm3777_vm2, %v4634_v56  ;;  %v11828_v49 = vld [vmem:[#allocation2 + $0x1f0] sm:$0xff] }
 0x371   : > { %9511 = vmatprep.subr.mxu1 %v11713_v55  ;;  %12612 = vst [vmem:[#allocation21_spill] sm:$0xff] %v11828_v49  ;;  %v11839_v56 = vld [vmem:[#allocation2 + $0x29] sm:$0xff] }
 0x373   : > { %9417 = vmatmul.mubr.msk.f32.gmra.mrb[2].mxu1 %vm3777_vm2, %v4635_v57  ;;  %v11845_v57 = vld [vmem:[#allocation2 + $0x31] sm:$0xff] }
 0x374   : > { %9419 = vmatprep.mubr.msk.f32.mxu1 %vm3777_vm2, %v11720_v58 }
 0x377   : > { %9420 = vmatmul.mubr.msk.f32.gmra.mrb[4].mxu1 %vm3777_vm2, %v11724_v59 }
 0x378   : > { %9422 = vmatprep.mubr.msk.f32.mxu1 %vm3777_vm2, %v11728_v61  ;;  %v8165_v61 = vld [vmem:[%s12404_s3 + $0x30] sm:$0xff] }
 0x37b   : > { %9423 = vmatmul.mubr.msk.f32.gmra.mrb[6].mxu1 %vm3777_vm2, %v11732_v62  ;;  %v11957_v62 = vld [vmem:[#allocation2 + $0x1f1] sm:$0xff] }
 0x37c   : > { %9425 = vmatprep.mubr.msk.f32.mxu1 %vm3777_vm2, %v11736_v63  ;;  %v11953_v63 = vld [vmem:[#allocation2 + $0x1e9] sm:$0xff] }
 0x37f   : > { %9426 = vmatmul.mubr.msk.f32.gmra.mrb[8].mxu1 %vm3777_vm2, %v11740_v2  ;;  %v11949_v2 = vld [vmem:[#allocation2 + $0x1d1] sm:$0xff] }
 0x380   : > { %9428 = vmatprep.mubr.msk.f32.mxu1 %vm3777_vm2, %v11744_v36  ;;  %v11945_v36 = vld [vmem:[#allocation2 + $0x1c9] sm:$0xff] }
 0x383   : > { %9429 = vmatmul.mubr.msk.f32.gmra.mrb[10].mxu1 %vm3777_vm2, %v11748_v5  ;;  %v11941_v5 = vld [vmem:[#allocation2 + $0x1b1] sm:$0xff] }
 0x384   : > { %9431 = vmatprep.mubr.msk.f32.mxu1 %vm3777_vm2, %v11752_v38  ;;  %v11937_v38 = vld [vmem:[#allocation2 + $0x1a9] sm:$0xff] }
 0x387   : > { %9432 = vmatmul.mubr.msk.f32.gmra.mrb[12].mxu1 %vm3777_vm2, %v11756_v35  ;;  %v11933_v35 = vld [vmem:[#allocation2 + $0x191] sm:$0xff] }
 0x388   : > { %9434 = vmatprep.mubr.msk.f32.mxu1 %vm3777_vm2, %v11760_v4  ;;  %v11929_v4 = vld [vmem:[#allocation2 + $0x189] sm:$0xff] }
 0x38b   : > { %9435 = vmatmul.mubr.msk.f32.gmra.mrb[14].mxu1 %vm3777_vm2, %v11764_v6  ;;  %v11925_v6 = vld [vmem:[#allocation2 + $0x171] sm:$0xff] }
 0x38c   : > { %9437 = vmatprep.mubr.msk.f32.mxu1 %vm3777_vm2, %v11768_v39  ;;  %v11921_v39 = vld [vmem:[#allocation2 + $0x169] sm:$0xff] }
 0x38f   : > { %9438 = vmatmul.mubr.msk.f32.gmra.mrb[16].mxu1 %vm3777_vm2, %v11772_v3  ;;  %v11917_v3 = vld [vmem:[#allocation2 + $0x151] sm:$0xff] }
 0x390   : > { %9440 = vmatprep.mubr.msk.f32.mxu1 %vm3777_vm2, %v11776_v0  ;;  %v11913_v0 = vld [vmem:[#allocation2 + $0x149] sm:$0xff] }
 0x393   : > { %9441 = vmatmul.mubr.msk.f32.gmra.mrb[18].mxu1 %vm3777_vm2, %v11780_v37  ;;  %v11909_v37 = vld [vmem:[#allocation2 + $0x131] sm:$0xff] }
 0x394   : > { %9443 = vmatprep.mubr.msk.f32.mxu1 %vm3777_vm2, %v11784_v1  ;;  %v11905_v1 = vld [vmem:[#allocation2 + $0x129] sm:$0xff] }
 0x397   : > { %9444 = vmatmul.mubr.msk.f32.gmra.mrb[20].mxu1 %vm3777_vm2, %v11788_v7  ;;  %v11901_v7 = vld [vmem:[#allocation2 + $0x111] sm:$0xff] }
 0x398   : > { %9446 = vmatprep.mubr.msk.f32.mxu1 %vm3777_vm2, %v11792_v8  ;;  %v11897_v8 = vld [vmem:[#allocation2 + $0x109] sm:$0xff] }
 0x39b   : > { %9447 = vmatmul.mubr.msk.f32.gmra.mrb[22].mxu1 %vm3777_vm2, %v11796_v9  ;;  %v11893_v9 = vld [vmem:[#allocation2 + $0xf1] sm:$0xff] }
 0x39c   : > { %9449 = vmatprep.mubr.msk.f32.mxu1 %vm3777_vm2, %v11800_v10  ;;  %v11889_v10 = vld [vmem:[#allocation2 + $0xe9] sm:$0xff] }
 0x39f   : > { %9450 = vmatmul.mubr.msk.f32.gmra.mrb[24].mxu1 %vm3777_vm2, %v11804_v11  ;;  %v11885_v11 = vld [vmem:[#allocation2 + $0xd1] sm:$0xff] }
 0x3a0   : > { %9452 = vmatprep.mubr.msk.f32.mxu1 %vm3777_vm2, %v11808_v12  ;;  %v11881_v12 = vld [vmem:[#allocation2 + $0xc9] sm:$0xff] }
 0x3a3   : > { %9453 = vmatmul.mubr.msk.f32.gmra.mrb[26].mxu1 %vm3777_vm2, %v11812_v13  ;;  %v11877_v13 = vld [vmem:[#allocation2 + $0xb1] sm:$0xff] }
 0x3a4   : > { %9455 = vmatprep.mubr.msk.f32.mxu1 %vm3777_vm2, %v11816_v14  ;;  %v11873_v14 = vld [vmem:[#allocation2 + $0xa9] sm:$0xff] }
 0x3a7   : > { %9456 = vmatmul.mubr.msk.f32.gmra.mrb[28].mxu1 %vm3777_vm2, %v11820_v15  ;;  %v11869_v15 = vld [vmem:[#allocation2 + $0x91] sm:$0xff] }
 0x3a8   : > { %9458 = vmatprep.mubr.msk.f32.mxu1 %vm3777_vm2, %v11824_v16  ;;  %v11865_v16 = vld [vmem:[#allocation2 + $0x89] sm:$0xff] }
 0x3ab   : > { %9459 = vmatmul.mubr.msk.f32.gmra.mrb[30].mxu1 %vm3777_vm2, %v11828_v49  ;;  %v11861_v49 = vld [vmem:[#allocation2 + $0x71] sm:$0xff] }
 0x3ac   : > { %9463 = vmatprep.mubr.msk.f32.mxu1 %vm3777_vm2, %v5019_v17  ;;  %v11849_v17 = vld [vmem:[#allocation2 + $0x49] sm:$0xff] }
 0x3af   : > { %9464 = vmatmul.mubr.msk.f32.vlgmr.msra.gmra.mrb[0].mxu1 %vm3777_vm2, %v5020_v52  ;;  %v11853_v52 = vld [vmem:[#allocation2 + $0x51] sm:$0xff] }
 0x3b0   : > { %9512 = vmatpush3.msra.mxu1 %v11713_v55  ;;  %9466 = vmatprep.mubr.msk.f32.mxu1 %vm3777_vm2, %v11839_v56  ;;  %v11857_v55 = vld [vmem:[#allocation2 + $0x69] sm:$0xff] }
 0x3b1   : > { %9561 = vmatprep.subr.mxu1 %v11836_v54 }
 0x3b3   : > { %9467 = vmatmul.mubr.msk.f32.gmra.mrb[2].mxu1 %vm3777_vm2, %v11845_v57 }
 0x3b4   : > { %9469 = vmatprep.mubr.msk.f32.mxu1 %vm3777_vm2, %v11849_v17 }
 0x3b7   : > { %9470 = vmatmul.mubr.msk.f32.gmra.mrb[4].mxu1 %vm3777_vm2, %v11853_v52 }
 0x3b8   : > { %9472 = vmatprep.mubr.msk.f32.mxu1 %vm3777_vm2, %v11857_v55 }
 0x3bb   : > { %9473 = vmatmul.mubr.msk.f32.gmra.mrb[6].mxu1 %vm3777_vm2, %v11861_v49 }
 0x3bc   : > { %9475 = vmatprep.mubr.msk.f32.mxu1 %vm3777_vm2, %v11865_v16 }
 0x3bf   : > { %9476 = vmatmul.mubr.msk.f32.gmra.mrb[8].mxu1 %vm3777_vm2, %v11869_v15 }
 0x3c0   : > { %9478 = vmatprep.mubr.msk.f32.mxu1 %vm3777_vm2, %v11873_v14 }
 0x3c3   : > { %9479 = vmatmul.mubr.msk.f32.gmra.mrb[10].mxu1 %vm3777_vm2, %v11877_v13 }
 0x3c4   : > { %9481 = vmatprep.mubr.msk.f32.mxu1 %vm3777_vm2, %v11881_v12 }
 0x3c7   : > { %9482 = vmatmul.mubr.msk.f32.gmra.mrb[12].mxu1 %vm3777_vm2, %v11885_v11 }
 0x3c8   : > { %9484 = vmatprep.mubr.msk.f32.mxu1 %vm3777_vm2, %v11889_v10 }
 0x3cb   : > { %9485 = vmatmul.mubr.msk.f32.gmra.mrb[14].mxu1 %vm3777_vm2, %v11893_v9 }
 0x3cc   : > { %9487 = vmatprep.mubr.msk.f32.mxu1 %vm3777_vm2, %v11897_v8 }
 0x3cf   : > { %9488 = vmatmul.mubr.msk.f32.gmra.mrb[16].mxu1 %vm3777_vm2, %v11901_v7 }
 0x3d0   : > { %9490 = vmatprep.mubr.msk.f32.mxu1 %vm3777_vm2, %v11905_v1 }
 0x3d3   : > { %9491 = vmatmul.mubr.msk.f32.gmra.mrb[18].mxu1 %vm3777_vm2, %v11909_v37 }
 0x3d4   : > { %9493 = vmatprep.mubr.msk.f32.mxu1 %vm3777_vm2, %v11913_v0 }
 0x3d7   : > { %9494 = vmatmul.mubr.msk.f32.gmra.mrb[20].mxu1 %vm3777_vm2, %v11917_v3 }
 0x3d8   : > { %9496 = vmatprep.mubr.msk.f32.mxu1 %vm3777_vm2, %v11921_v39 }
 0x3db   : > { %9497 = vmatmul.mubr.msk.f32.gmra.mrb[22].mxu1 %vm3777_vm2, %v11925_v6 }
 0x3dc   : > { %9499 = vmatprep.mubr.msk.f32.mxu1 %vm3777_vm2, %v11929_v4 }
 0x3df   : > { %9500 = vmatmul.mubr.msk.f32.gmra.mrb[24].mxu1 %vm3777_vm2, %v11933_v35 }
 0x3e0   : > { %9502 = vmatprep.mubr.msk.f32.mxu1 %vm3777_vm2, %v11937_v38 }
 0x3e3   : > { %9503 = vmatmul.mubr.msk.f32.gmra.mrb[26].mxu1 %vm3777_vm2, %v11941_v5 }
 0x3e4   : > { %9505 = vmatprep.mubr.msk.f32.mxu1 %vm3777_vm2, %v11945_v36 }
 0x3e7   : > { %9506 = vmatmul.mubr.msk.f32.gmra.mrb[28].mxu1 %vm3777_vm2, %v11949_v2 }
 0x3e8   : > { %9508 = vmatprep.mubr.msk.f32.mxu1 %vm3777_vm2, %v11953_v63 }
 0x3eb   : > { %9509 = vmatmul.mubr.msk.f32.gmra.mrb[30].mxu1 %vm3777_vm2, %v11957_v62 }
 0x3ec   : > { %9513 = vmatprep.mubr.msk.f32.mxu1 %vm3777_vm2, %v11587_v18  ;;  %v12025_v18 = vld [vmem:[#allocation2 + $0x207] sm:$0xff] }
 0x3ef   : > { %9514 = vmatmul.mubr.msk.f32.vlgmr.msra.gmra.mrb[0].mxu1 %vm3777_vm2, %v11593_v19  ;;  %v12029_v19 = vld [vmem:[#allocation2 + $0x20f] sm:$0xff] }
 0x3f0   : > { %9562 = vmatpush3.msra.mxu1 %v11836_v54  ;;  %9516 = vmatprep.mubr.msk.f32.mxu1 %vm3777_vm2, %v11597_v20  ;;  %v8198_v54 = vld [vmem:[%s12404_s3 + $0x38] sm:$0xff] }
 0x3f1   : > { %9611 = vmatprep.subr.mxu1 %v8165_v61 }
 0x3f3   : > { %9517 = vmatmul.mubr.msk.f32.gmra.mrb[2].mxu1 %vm3777_vm2, %v11601_v21 }
 0x3f4   : > { %9519 = vmatprep.mubr.msk.f32.mxu1 %vm3777_vm2, %v11605_v60 }
 0x3f7   : > { %9520 = vmatmul.mubr.msk.f32.gmra.mrb[4].mxu1 %vm3777_vm2, %v11609_v22 }
 0x3f8   : > { %9522 = vmatprep.mubr.msk.f32.mxu1 %vm3777_vm2, %v11613_v23 }
 0x3fb   : > { %9523 = vmatmul.mubr.msk.f32.gmra.mrb[6].mxu1 %vm3777_vm2, %v11617_v24 }
 0x3fc   : > { %9525 = vmatprep.mubr.msk.f32.mxu1 %vm3777_vm2, %v11621_v25 }
 0x3ff   : > { %9526 = vmatmul.mubr.msk.f32.gmra.mrb[8].mxu1 %vm3777_vm2, %v11625_v26 }
 0x400   : > { %9528 = vmatprep.mubr.msk.f32.mxu1 %vm3777_vm2, %v11629_v27 }
 0x403   : > { %9529 = vmatmul.mubr.msk.f32.gmra.mrb[10].mxu1 %vm3777_vm2, %v11633_v28 }
 0x404   : > { %9531 = vmatprep.mubr.msk.f32.mxu1 %vm3777_vm2, %v11637_v29 }
 0x407   : > { %9532 = vmatmul.mubr.msk.f32.gmra.mrb[12].mxu1 %vm3777_vm2, %v11641_v30 }
 0x408   : > { %9534 = vmatprep.mubr.msk.f32.mxu1 %vm3777_vm2, %v11645_v31 }
 0x40b   : > { %9535 = vmatmul.mubr.msk.f32.gmra.mrb[14].mxu1 %vm3777_vm2, %v11649_v32 }
 0x40c   : > { %9537 = vmatprep.mubr.msk.f32.mxu1 %vm3777_vm2, %v11653_v33 }
 0x40f   : > { %9538 = vmatmul.mubr.msk.f32.gmra.mrb[16].mxu1 %vm3777_vm2, %v11657_v34 }
 0x410   : > { %9540 = vmatprep.mubr.msk.f32.mxu1 %vm3777_vm2, %v11661_v40 }
 0x413   : > { %9541 = vmatmul.mubr.msk.f32.gmra.mrb[18].mxu1 %vm3777_vm2, %v11665_v41 }
 0x414   : > { %9543 = vmatprep.mubr.msk.f32.mxu1 %vm3777_vm2, %v11669_v42 }
 0x417   : > { %9544 = vmatmul.mubr.msk.f32.gmra.mrb[20].mxu1 %vm3777_vm2, %v11673_v43 }
 0x418   : > { %9546 = vmatprep.mubr.msk.f32.mxu1 %vm3777_vm2, %v11677_v44 }
 0x41b   : > { %9547 = vmatmul.mubr.msk.f32.gmra.mrb[22].mxu1 %vm3777_vm2, %v11681_v45 }
 0x41c   : > { %9549 = vmatprep.mubr.msk.f32.mxu1 %vm3777_vm2, %v11685_v46 }
 0x41f   : > { %9550 = vmatmul.mubr.msk.f32.gmra.mrb[24].mxu1 %vm3777_vm2, %v11689_v47 }
 0x420   : > { %9552 = vmatprep.mubr.msk.f32.mxu1 %vm3777_vm2, %v11693_v48 }
 0x423   : > { %9553 = vmatmul.mubr.msk.f32.gmra.mrb[26].mxu1 %vm3777_vm2, %v11697_v50 }
 0x424   : > { %9555 = vmatprep.mubr.msk.f32.mxu1 %vm3777_vm2, %v11701_v51 }
 0x427   : > { %9556 = vmatmul.mubr.msk.f32.gmra.mrb[28].mxu1 %vm3777_vm2, %v11705_v53 }
 0x428   : > { %9558 = vmatprep.mubr.msk.f32.mxu1 %vm3777_vm2, %v12025_v18 }
 0x42b   : > { %9559 = vmatmul.mubr.msk.f32.gmra.mrb[30].mxu1 %vm3777_vm2, %v12029_v19 }
 0x42c   : > { %9563 = vmatprep.mubr.msk.f32.mxu1 %vm3777_vm2, %v11839_v56  ;;  %v12100_v56 = vld [vmem:[#allocation2 + $0x211] sm:$0xff] }
 0x42f   : > { %9564 = vmatmul.mubr.msk.f32.vlgmr.msra.gmra.mrb[0].mxu1 %vm3777_vm2, %v11845_v57  ;;  %v8231_v57 = vld [vmem:[%s12404_s3 + $0x40] sm:$0xff] }
 0x430   : > { %9612 = vmatpush3.msra.mxu1 %v8165_v61  ;;  %9566 = vmatprep.mubr.msk.f32.mxu1 %vm3777_vm2, %v11849_v17  ;;  %v12096_v61 = vld [vmem:[#allocation2 + $0x209] sm:$0xff] }
 0x431   : > { %9661 = vmatprep.subr.mxu1 %v8198_v54 }
 0x433   : > { %9567 = vmatmul.mubr.msk.f32.gmra.mrb[2].mxu1 %vm3777_vm2, %v11853_v52 }
 0x434   : > { %9569 = vmatprep.mubr.msk.f32.mxu1 %vm3777_vm2, %v11857_v55 }
 0x437   : > { %9570 = vmatmul.mubr.msk.f32.gmra.mrb[4].mxu1 %vm3777_vm2, %v11861_v49 }
 0x438   : > { %9572 = vmatprep.mubr.msk.f32.mxu1 %vm3777_vm2, %v11865_v16 }
 0x43b   : > { %9573 = vmatmul.mubr.msk.f32.gmra.mrb[6].mxu1 %vm3777_vm2, %v11869_v15 }
 0x43c   : > { %9575 = vmatprep.mubr.msk.f32.mxu1 %vm3777_vm2, %v11873_v14 }
 0x43f   : > { %9576 = vmatmul.mubr.msk.f32.gmra.mrb[8].mxu1 %vm3777_vm2, %v11877_v13 }
 0x440   : > { %9578 = vmatprep.mubr.msk.f32.mxu1 %vm3777_vm2, %v11881_v12 }
 0x443   : > { %9579 = vmatmul.mubr.msk.f32.gmra.mrb[10].mxu1 %vm3777_vm2, %v11885_v11 }
 0x444   : > { %9581 = vmatprep.mubr.msk.f32.mxu1 %vm3777_vm2, %v11889_v10 }
 0x447   : > { %9582 = vmatmul.mubr.msk.f32.gmra.mrb[12].mxu1 %vm3777_vm2, %v11893_v9 }
 0x448   : > { %9584 = vmatprep.mubr.msk.f32.mxu1 %vm3777_vm2, %v11897_v8 }
 0x44b   : > { %9585 = vmatmul.mubr.msk.f32.gmra.mrb[14].mxu1 %vm3777_vm2, %v11901_v7 }
 0x44c   : > { %9587 = vmatprep.mubr.msk.f32.mxu1 %vm3777_vm2, %v11905_v1 }
 0x44f   : > { %9588 = vmatmul.mubr.msk.f32.gmra.mrb[16].mxu1 %vm3777_vm2, %v11909_v37 }
 0x450   : > { %9590 = vmatprep.mubr.msk.f32.mxu1 %vm3777_vm2, %v11913_v0 }
 0x453   : > { %9591 = vmatmul.mubr.msk.f32.gmra.mrb[18].mxu1 %vm3777_vm2, %v11917_v3 }
 0x454   : > { %9593 = vmatprep.mubr.msk.f32.mxu1 %vm3777_vm2, %v11921_v39 }
 0x457   : > { %9594 = vmatmul.mubr.msk.f32.gmra.mrb[20].mxu1 %vm3777_vm2, %v11925_v6 }
 0x458   : > { %9596 = vmatprep.mubr.msk.f32.mxu1 %vm3777_vm2, %v11929_v4 }
 0x45b   : > { %9597 = vmatmul.mubr.msk.f32.gmra.mrb[22].mxu1 %vm3777_vm2, %v11933_v35 }
 0x45c   : > { %9599 = vmatprep.mubr.msk.f32.mxu1 %vm3777_vm2, %v11937_v38 }
 0x45f   : > { %9600 = vmatmul.mubr.msk.f32.gmra.mrb[24].mxu1 %vm3777_vm2, %v11941_v5 }
 0x460   : > { %9602 = vmatprep.mubr.msk.f32.mxu1 %vm3777_vm2, %v11945_v36 }
 0x463   : > { %9603 = vmatmul.mubr.msk.f32.gmra.mrb[26].mxu1 %vm3777_vm2, %v11949_v2 }
 0x464   : > { %9605 = vmatprep.mubr.msk.f32.mxu1 %vm3777_vm2, %v11953_v63 }
 0x467   : > { %9606 = vmatmul.mubr.msk.f32.gmra.mrb[28].mxu1 %vm3777_vm2, %v11957_v62 }
 0x468   : > { %9608 = vmatprep.mubr.msk.f32.mxu1 %vm3777_vm2, %v12096_v61 }
 0x46b   : > { %9609 = vmatmul.mubr.msk.f32.gmra.mrb[30].mxu1 %vm3777_vm2, %v12100_v56 }
 0x46c   : > { %9613 = vmatprep.mubr.msk.f32.mxu1 %vm3777_vm2, %v11597_v20  ;;  %v6211_v20 = vld [vmem:[#allocation2 + $0x227] sm:$0xff] }
 0x46f   : > { %9614 = vmatmul.mubr.msk.f32.vlgmr.msra.gmra.mrb[0].mxu1 %vm3777_vm2, %v11601_v21  ;;  %v6212_v21 = vld [vmem:[#allocation2 + $0x22f] sm:$0xff] }
 0x470   : > { %9662 = vmatpush3.msra.mxu1 %v8198_v54  ;;  %9616 = vmatprep.mubr.msk.f32.mxu1 %vm3777_vm2, %v11605_v60  ;;  %v12613_v60 = vld [vmem:[#allocation11_spill] sm:$0xff] }
 0x471   : > { %9711 = vmatprep.subr.mxu1 %v8231_v57 }
 0x473   : > { %9617 = vmatmul.mubr.msk.f32.gmra.mrb[2].mxu1 %vm3777_vm2, %v11609_v22  ;;  %v12614_v22 = vld [vmem:[#allocation12_spill] sm:$0xff] }
 0x474   : > { %9619 = vmatprep.mubr.msk.f32.mxu1 %vm3777_vm2, %v11613_v23  ;;  %v12615_v23 = vld [vmem:[#allocation18_spill] sm:$0xff] }
 0x477   : > { %9620 = vmatmul.mubr.msk.f32.gmra.mrb[4].mxu1 %vm3777_vm2, %v11617_v24  ;;  %v12616_v24 = vld [vmem:[#allocation28_spill] sm:$0xff] }
 0x478   : > { %9622 = vmatprep.mubr.msk.f32.mxu1 %vm3777_vm2, %v11621_v25  ;;  %v12617_v25 = vld [vmem:[#allocation30_spill] sm:$0xff] }
 0x47b   : > { %9623 = vmatmul.mubr.msk.f32.gmra.mrb[6].mxu1 %vm3777_vm2, %v11625_v26  ;;  %v12618_v26 = vld [vmem:[#allocation31_spill] sm:$0xff] }
 0x47c   : > { %9625 = vmatprep.mubr.msk.f32.mxu1 %vm3777_vm2, %v11629_v27  ;;  %v12619_v27 = vld [vmem:[#allocation33_spill] sm:$0xff] }
 0x47f   : > { %9626 = vmatmul.mubr.msk.f32.gmra.mrb[8].mxu1 %vm3777_vm2, %v11633_v28  ;;  %v12620_v28 = vld [vmem:[#allocation35_spill] sm:$0xff] }
 0x480   : > { %9628 = vmatprep.mubr.msk.f32.mxu1 %vm3777_vm2, %v11637_v29  ;;  %v12621_v29 = vld [vmem:[#allocation3_spill] sm:$0xff] }
 0x483   : > { %9629 = vmatmul.mubr.msk.f32.gmra.mrb[10].mxu1 %vm3777_vm2, %v11641_v30  ;;  %v12622_v30 = vld [vmem:[#allocation4_spill] sm:$0xff] }
 0x484   : > { %9631 = vmatprep.mubr.msk.f32.mxu1 %vm3777_vm2, %v11645_v31  ;;  %v12623_v31 = vld [vmem:[#allocation5_spill] sm:$0xff] }
 0x487   : > { %9632 = vmatmul.mubr.msk.f32.gmra.mrb[12].mxu1 %vm3777_vm2, %v11649_v32  ;;  %v12624_v32 = vld [vmem:[#allocation6_spill] sm:$0xff] }
 0x488   : > { %9634 = vmatprep.mubr.msk.f32.mxu1 %vm3777_vm2, %v11653_v33  ;;  %v12625_v33 = vld [vmem:[#allocation7_spill] sm:$0xff] }
 0x48b   : > { %9635 = vmatmul.mubr.msk.f32.gmra.mrb[14].mxu1 %vm3777_vm2, %v11657_v34  ;;  %v12626_v34 = vld [vmem:[#allocation8_spill] sm:$0xff] }
 0x48c   : > { %9637 = vmatprep.mubr.msk.f32.mxu1 %vm3777_vm2, %v11661_v40  ;;  %v12627_v40 = vld [vmem:[#allocation9_spill] sm:$0xff] }
 0x48f   : > { %9638 = vmatmul.mubr.msk.f32.gmra.mrb[16].mxu1 %vm3777_vm2, %v11665_v41  ;;  %v12628_v41 = vld [vmem:[#allocation10_spill] sm:$0xff] }
 0x490   : > { %9640 = vmatprep.mubr.msk.f32.mxu1 %vm3777_vm2, %v11669_v42  ;;  %v12629_v42 = vld [vmem:[#allocation37_spill] sm:$0xff] }
 0x493   : > { %9641 = vmatmul.mubr.msk.f32.gmra.mrb[18].mxu1 %vm3777_vm2, %v11673_v43  ;;  %v12630_v43 = vld [vmem:[#allocation38_spill] sm:$0xff] }
 0x494   : > { %9643 = vmatprep.mubr.msk.f32.mxu1 %vm3777_vm2, %v11677_v44  ;;  %v12631_v44 = vld [vmem:[#allocation13_spill] sm:$0xff] }
 0x497   : > { %9644 = vmatmul.mubr.msk.f32.gmra.mrb[20].mxu1 %vm3777_vm2, %v11681_v45  ;;  %v12632_v45 = vld [vmem:[#allocation14_spill] sm:$0xff] }
 0x498   : > { %9646 = vmatprep.mubr.msk.f32.mxu1 %vm3777_vm2, %v11685_v46  ;;  %v12633_v46 = vld [vmem:[#allocation15_spill] sm:$0xff] }
 0x49b   : > { %9647 = vmatmul.mubr.msk.f32.gmra.mrb[22].mxu1 %vm3777_vm2, %v11689_v47  ;;  %v12634_v47 = vld [vmem:[#allocation16_spill] sm:$0xff] }
 0x49c   : > { %9649 = vmatprep.mubr.msk.f32.mxu1 %vm3777_vm2, %v11693_v48  ;;  %v12635_v48 = vld [vmem:[#allocation17_spill] sm:$0xff] }
 0x49f   : > { %9650 = vmatmul.mubr.msk.f32.gmra.mrb[24].mxu1 %vm3777_vm2, %v11697_v50  ;;  %v12636_v50 = vld [vmem:[#allocation19_spill] sm:$0xff] }
 0x4a0   : > { %9652 = vmatprep.mubr.msk.f32.mxu1 %vm3777_vm2, %v11701_v51  ;;  %v12637_v51 = vld [vmem:[#allocation20_spill] sm:$0xff] }
 0x4a3   : > { %9653 = vmatmul.mubr.msk.f32.gmra.mrb[26].mxu1 %vm3777_vm2, %v11705_v53  ;;  %v12638_v53 = vld [vmem:[#allocation21_spill] sm:$0xff] }
 0x4a4   : > { %9655 = vmatprep.mubr.msk.f32.mxu1 %vm3777_vm2, %v12025_v18  ;;  %v6597_v18 = vld [vmem:[#allocation2 + $0x210] sm:$0xff] }
 0x4a7   : > { %9656 = vmatmul.mubr.msk.f32.gmra.mrb[28].mxu1 %vm3777_vm2, %v12029_v19  ;;  %v6599_v19 = vld [vmem:[#allocation2 + $0x230] sm:$0xff] }
 0x4a8   : > { %9658 = vmatprep.mubr.msk.f32.mxu1 %vm3777_vm2, %v6211_v20 }
 0x4ab   : > { %9659 = vmatmul.mubr.msk.f32.gmra.mrb[30].mxu1 %vm3777_vm2, %v6212_v21 }
 0x4ac   : > { %9663 = vmatprep.mubr.msk.f32.mxu1 %vm3777_vm2, %v11720_v58  ;;  %v6596_v58 = vld [vmem:[#allocation2 + $0x208] sm:$0xff] }
 0x4af   : > { %9664 = vmatmul.mubr.msk.f32.vlgmr.msra.gmra.mrb[0].mxu1 %vm3777_vm2, %v11724_v59  ;;  %v6598_v59 = vld [vmem:[#allocation2 + $0x228] sm:$0xff] }
 0x4b0   : > { %9712 = vmatpush3.msra.mxu1 %v8231_v57  ;;  %9666 = vmatprep.mubr.msk.f32.mxu1 %vm3777_vm2, %v12613_v60 }
 0x4b3   : > { %9667 = vmatmul.mubr.msk.f32.gmra.mrb[2].mxu1 %vm3777_vm2, %v12614_v22 }
 0x4b4   : > { %9669 = vmatprep.mubr.msk.f32.mxu1 %vm3777_vm2, %v12615_v23 }
 0x4b7   : > { %9670 = vmatmul.mubr.msk.f32.gmra.mrb[4].mxu1 %vm3777_vm2, %v12616_v24 }
 0x4b8   : > { %9672 = vmatprep.mubr.msk.f32.mxu1 %vm3777_vm2, %v12617_v25 }
 0x4bb   : > { %9673 = vmatmul.mubr.msk.f32.gmra.mrb[6].mxu1 %vm3777_vm2, %v12618_v26 }
 0x4bc   : > { %9675 = vmatprep.mubr.msk.f32.mxu1 %vm3777_vm2, %v12619_v27 }
 0x4bf   : > { %9676 = vmatmul.mubr.msk.f32.gmra.mrb[8].mxu1 %vm3777_vm2, %v12620_v28 }
 0x4c0   : > { %9678 = vmatprep.mubr.msk.f32.mxu1 %vm3777_vm2, %v12621_v29 }
 0x4c3   : > { %9679 = vmatmul.mubr.msk.f32.gmra.mrb[10].mxu1 %vm3777_vm2, %v12622_v30 }
 0x4c4   : > { %9681 = vmatprep.mubr.msk.f32.mxu1 %vm3777_vm2, %v12623_v31 }
 0x4c7   : > { %9682 = vmatmul.mubr.msk.f32.gmra.mrb[12].mxu1 %vm3777_vm2, %v12624_v32 }
 0x4c8   : > { %9684 = vmatprep.mubr.msk.f32.mxu1 %vm3777_vm2, %v12625_v33 }
 0x4cb   : > { %9685 = vmatmul.mubr.msk.f32.gmra.mrb[14].mxu1 %vm3777_vm2, %v12626_v34 }
 0x4cc   : > { %9687 = vmatprep.mubr.msk.f32.mxu1 %vm3777_vm2, %v12627_v40 }
 0x4cf   : > { %9688 = vmatmul.mubr.msk.f32.gmra.mrb[16].mxu1 %vm3777_vm2, %v12628_v41 }
 0x4d0   : > { %9690 = vmatprep.mubr.msk.f32.mxu1 %vm3777_vm2, %v12629_v42 }
 0x4d3   : > { %9691 = vmatmul.mubr.msk.f32.gmra.mrb[18].mxu1 %vm3777_vm2, %v12630_v43 }
 0x4d4   : > { %9693 = vmatprep.mubr.msk.f32.mxu1 %vm3777_vm2, %v12631_v44 }
 0x4d7   : > { %9694 = vmatmul.mubr.msk.f32.gmra.mrb[20].mxu1 %vm3777_vm2, %v12632_v45 }
 0x4d8   : > { %9696 = vmatprep.mubr.msk.f32.mxu1 %vm3777_vm2, %v12633_v46 }
 0x4db   : > { %9697 = vmatmul.mubr.msk.f32.gmra.mrb[22].mxu1 %vm3777_vm2, %v12634_v47 }
 0x4dc   : > { %9699 = vmatprep.mubr.msk.f32.mxu1 %vm3777_vm2, %v12635_v48 }
 0x4df   : > { %9700 = vmatmul.mubr.msk.f32.gmra.mrb[24].mxu1 %vm3777_vm2, %v12636_v50 }
 0x4e0   : > { %9702 = vmatprep.mubr.msk.f32.mxu1 %vm3777_vm2, %v12637_v51 }
 0x4e3   : > { %9703 = vmatmul.mubr.msk.f32.gmra.mrb[26].mxu1 %vm3777_vm2, %v12638_v53 }
 0x4e4   : > { %9705 = vmatprep.mubr.msk.f32.mxu1 %vm3777_vm2, %v6596_v58 }
 0x4e7   : > { %9706 = vmatmul.mubr.msk.f32.gmra.mrb[28].mxu1 %vm3777_vm2, %v6597_v18 }
 0x4e8   : > { %9708 = vmatprep.mubr.msk.f32.mxu1 %vm3777_vm2, %v6598_v59 }
 0x4eb   : > { %9709 = vmatmul.mubr.msk.f32.gmra.mrb[30].mxu1 %vm3777_vm2, %v6599_v19 }
 0x4ec   : > { %9713 = vmatprep.mubr.msk.f32.mxu1 %vm3777_vm2, %v11849_v17 }
 0x4ef   : > { %9714 = vmatmul.mubr.msk.f32.vlgmr.msra.gmra.mrb[0].mxu1 %vm3777_vm2, %v11853_v52 }
 0x4f0   : > { %9716 = vmatprep.mubr.msk.f32.mxu1 %vm3777_vm2, %v11857_v55 }
 0x4f3   : > { %9717 = vmatmul.mubr.msk.f32.gmra.mrb[2].mxu1 %vm3777_vm2, %v11861_v49 }
 0x4f4   : > { %9719 = vmatprep.mubr.msk.f32.mxu1 %vm3777_vm2, %v11865_v16 }
 0x4f7   : > { %9720 = vmatmul.mubr.msk.f32.gmra.mrb[4].mxu1 %vm3777_vm2, %v11869_v15 }
 0x4f8   : > { %9722 = vmatprep.mubr.msk.f32.mxu1 %vm3777_vm2, %v11873_v14 }
 0x4fb   : > { %9723 = vmatmul.mubr.msk.f32.gmra.mrb[6].mxu1 %vm3777_vm2, %v11877_v13 }
 0x4fc   : > { %9725 = vmatprep.mubr.msk.f32.mxu1 %vm3777_vm2, %v11881_v12 }
 0x4ff   : > { %9726 = vmatmul.mubr.msk.f32.gmra.mrb[8].mxu1 %vm3777_vm2, %v11885_v11 }
 0x500   : > { %9728 = vmatprep.mubr.msk.f32.mxu1 %vm3777_vm2, %v11889_v10 }
 0x503   : > { %9729 = vmatmul.mubr.msk.f32.gmra.mrb[10].mxu1 %vm3777_vm2, %v11893_v9 }
 0x504   : > { %9731 = vmatprep.mubr.msk.f32.mxu1 %vm3777_vm2, %v11897_v8 }
 0x507   : > { %9732 = vmatmul.mubr.msk.f32.gmra.mrb[12].mxu1 %vm3777_vm2, %v11901_v7 }
 0x508   : > { %9734 = vmatprep.mubr.msk.f32.mxu1 %vm3777_vm2, %v11905_v1 }
 0x50b   : > { %9735 = vmatmul.mubr.msk.f32.gmra.mrb[14].mxu1 %vm3777_vm2, %v11909_v37 }
 0x50c   : > { %9737 = vmatprep.mubr.msk.f32.mxu1 %vm3777_vm2, %v11913_v0 }
 0x50f   : > { %9738 = vmatmul.mubr.msk.f32.gmra.mrb[16].mxu1 %vm3777_vm2, %v11917_v3 }
 0x510   : > { %9740 = vmatprep.mubr.msk.f32.mxu1 %vm3777_vm2, %v11921_v39 }
 0x513   : > { %9741 = vmatmul.mubr.msk.f32.gmra.mrb[18].mxu1 %vm3777_vm2, %v11925_v6 }
 0x514   : > { %9743 = vmatprep.mubr.msk.f32.mxu1 %vm3777_vm2, %v11929_v4 }
 0x517   : > { %9744 = vmatmul.mubr.msk.f32.gmra.mrb[20].mxu1 %vm3777_vm2, %v11933_v35  ;;  %v6985_v35 = vld [vmem:[#allocation2 + $0x229] sm:$0xff] }
 0x518   : > { %9746 = vmatprep.mubr.msk.f32.mxu1 %vm3777_vm2, %v11937_v38 }
 0x51b   : > { %9747 = vmatmul.mubr.msk.f32.gmra.mrb[22].mxu1 %vm3777_vm2, %v11941_v5  ;;  %v6986_v5 = vld [vmem:[#allocation2 + $0x231] sm:$0xff] }
 0x51c   : > { %9749 = vmatprep.mubr.msk.f32.mxu1 %vm3777_vm2, %v11945_v36 }
 0x51f   : > { %9750 = vmatmul.mubr.msk.f32.gmra.mrb[24].mxu1 %vm3777_vm2, %v11949_v2  ;;  %v12294_v2 = vld [vmem:[%s12405_s4] ss:$0 sm:$0xff] }
 0x520   : > { %9752 = vmatprep.mubr.msk.f32.mxu1 %vm3777_vm2, %v11953_v63 }
 0x523   : > { %9753 = vmatmul.mubr.msk.f32.gmra.mrb[26].mxu1 %vm3777_vm2, %v11957_v62 }
 0x524   : > { %9755 = vmatprep.mubr.msk.f32.mxu1 %vm3777_vm2, %v12096_v61 }
 0x527   : > { %9756 = vmatmul.mubr.msk.f32.gmra.mrb[28].mxu1 %vm3777_vm2, %v12100_v56 }
 0x528   : > { %9758 = vmatprep.mubr.msk.f32.mxu1 %vm3777_vm2, %v6985_v35 }
 0x52b   : > { %9759 = vmatmul.mubr.msk.f32.gmra.mrb[30].mxu1 %vm3777_vm2, %v6986_v5 }
 0x5c2   : > { %v9715_v63 = vpop.f32.mrb[0].mxu1 }
 0x5c3   : > { %v9793_v62 = vadd.f32 %v9715_v63, %v12294_v2  ;;  %v7151_v36 = vpop.f32.mrb[1].mxu1 }
 0x5c4   : > { %v9794_v38 = vadd.f32 %v12294_v2, %v7151_v36 }
 0x5c5   : > { %v7343_v4 = vmax.f32 %v9793_v62, 0.0 }
 0x5c6   : > { %v7342_v6 = vmax.f32 %v9794_v38, 0.0  ;;  %v9718_v39 = vpop.f32.mrb[2].mxu1 }
 0x5c7   : > { %7375 = vst.msk [vmem:[%s12301_s21 + $0x8] sm:$0xff] %vm3777_vm2, %v7343_v4  ;;  %v9795_v3 = vadd.f32 %v9718_v39, %v12294_v2  ;;  %v7161_v0 = vpop.f32.mrb[3].mxu1 }
 0x5c8   : > { %7374 = vst.msk [vmem:[%s12301_s21] sm:$0xff] %vm3777_vm2, %v7342_v6  ;;  %v9796_v37 = vadd.f32 %v12294_v2, %v7161_v0 }
 0x5c9   : > { %v7345_v1 = vmax.f32 %v9795_v3, 0.0 }
 0x5ca   : > { %v7344_v7 = vmax.f32 %v9796_v37, 0.0  ;;  %v9721_v8 = vpop.f32.mrb[4].mxu1 }
 0x5cb   : > { %7377 = vst.msk [vmem:[%s12301_s21 + $0x18] sm:$0xff] %vm3777_vm2, %v7345_v1  ;;  %v9797_v9 = vadd.f32 %v9721_v8, %v12294_v2  ;;  %v7171_v10 = vpop.f32.mrb[5].mxu1 }
 0x5cc   : > { %7376 = vst.msk [vmem:[%s12301_s21 + $0x10] sm:$0xff] %vm3777_vm2, %v7344_v7  ;;  %v9798_v11 = vadd.f32 %v12294_v2, %v7171_v10 }
 0x5cd   : > { %v7347_v12 = vmax.f32 %v9797_v9, 0.0 }
 0x5ce   : > { %v7346_v13 = vmax.f32 %v9798_v11, 0.0  ;;  %v9724_v14 = vpop.f32.mrb[6].mxu1 }
 0x5cf   : > { %7379 = vst.msk [vmem:[%s12301_s21 + $0x28] sm:$0xff] %vm3777_vm2, %v7347_v12  ;;  %v9799_v15 = vadd.f32 %v9724_v14, %v12294_v2  ;;  %v7181_v16 = vpop.f32.mrb[7].mxu1 }
 0x5d0   : > { %7378 = vst.msk [vmem:[%s12301_s21 + $0x20] sm:$0xff] %vm3777_vm2, %v7346_v13  ;;  %v9800_v49 = vadd.f32 %v12294_v2, %v7181_v16 }
 0x5d1   : > { %v7349_v17 = vmax.f32 %v9799_v15, 0.0 }
 0x5d2   : > { %v7348_v52 = vmax.f32 %v9800_v49, 0.0  ;;  %v9727_v55 = vpop.f32.mrb[8].mxu1 }
 0x5d3   : > { %7381 = vst.msk [vmem:[%s12301_s21 + $0x38] sm:$0xff] %vm3777_vm2, %v7349_v17  ;;  %v9801_v54 = vadd.f32 %v9727_v55, %v12294_v2  ;;  %v7191_v61 = vpop.f32.mrb[9].mxu1 }
 0x5d4   : > { %7380 = vst.msk [vmem:[%s12301_s21 + $0x30] sm:$0xff] %vm3777_vm2, %v7348_v52  ;;  %v9802_v56 = vadd.f32 %v12294_v2, %v7191_v61 }
 0x5d5   : > { %v7351_v57 = vmax.f32 %v9801_v54, 0.0 }
 0x5d6   : > { %v7350_v20 = vmax.f32 %v9802_v56, 0.0  ;;  %v9730_v21 = vpop.f32.mrb[10].mxu1 }
 0x5d7   : > { %7383 = vst.msk [vmem:[%s12301_s21 + $0x48] sm:$0xff] %vm3777_vm2, %v7351_v57  ;;  %v9803_v60 = vadd.f32 %v9730_v21, %v12294_v2  ;;  %v7201_v22 = vpop.f32.mrb[11].mxu1 }
 0x5d8   : > { %7382 = vst.msk [vmem:[%s12301_s21 + $0x40] sm:$0xff] %vm3777_vm2, %v7350_v20  ;;  %v9804_v23 = vadd.f32 %v12294_v2, %v7201_v22 }
 0x5d9   : > { %v7353_v24 = vmax.f32 %v9803_v60, 0.0 }
 0x5da   : > { %v7352_v25 = vmax.f32 %v9804_v23, 0.0  ;;  %v9733_v26 = vpop.f32.mrb[12].mxu1 }
 0x5db   : > { %7385 = vst.msk [vmem:[%s12301_s21 + $0x58] sm:$0xff] %vm3777_vm2, %v7353_v24  ;;  %v9805_v27 = vadd.f32 %v9733_v26, %v12294_v2  ;;  %v7211_v28 = vpop.f32.mrb[13].mxu1 }
 0x5dc   : > { %7384 = vst.msk [vmem:[%s12301_s21 + $0x50] sm:$0xff] %vm3777_vm2, %v7352_v25  ;;  %v9806_v29 = vadd.f32 %v12294_v2, %v7211_v28 }
 0x5dd   : > { %v7355_v30 = vmax.f32 %v9805_v27, 0.0 }
 0x5de   : > { %v7354_v31 = vmax.f32 %v9806_v29, 0.0  ;;  %v9736_v32 = vpop.f32.mrb[14].mxu1 }
 0x5df   : > { %7387 = vst.msk [vmem:[%s12301_s21 + $0x68] sm:$0xff] %vm3777_vm2, %v7355_v30  ;;  %v9807_v33 = vadd.f32 %v9736_v32, %v12294_v2  ;;  %v7221_v34 = vpop.f32.mrb[15].mxu1 }
 0x5e0   : > { %7386 = vst.msk [vmem:[%s12301_s21 + $0x60] sm:$0xff] %vm3777_vm2, %v7354_v31  ;;  %v9808_v40 = vadd.f32 %v12294_v2, %v7221_v34 }
 0x5e1   : > { %v7357_v41 = vmax.f32 %v9807_v33, 0.0 }
 0x5e2   : > { %v7356_v42 = vmax.f32 %v9808_v40, 0.0  ;;  %v9739_v43 = vpop.f32.mrb[16].mxu1 }
 0x5e3   : > { %7389 = vst.msk [vmem:[%s12301_s21 + $0x78] sm:$0xff] %vm3777_vm2, %v7357_v41  ;;  %v9809_v44 = vadd.f32 %v9739_v43, %v12294_v2  ;;  %v7231_v45 = vpop.f32.mrb[17].mxu1 }
 0x5e4   : > { %7388 = vst.msk [vmem:[%s12301_s21 + $0x70] sm:$0xff] %vm3777_vm2, %v7356_v42  ;;  %v9810_v46 = vadd.f32 %v12294_v2, %v7231_v45 }
 0x5e5   : > { %v7359_v47 = vmax.f32 %v9809_v44, 0.0 }
 0x5e6   : > { %v7358_v48 = vmax.f32 %v9810_v46, 0.0  ;;  %v9742_v50 = vpop.f32.mrb[18].mxu1 }
 0x5e7   : > { %7391 = vst.msk [vmem:[%s12301_s21 + $0x88] sm:$0xff] %vm3777_vm2, %v7359_v47  ;;  %v9811_v51 = vadd.f32 %v9742_v50, %v12294_v2  ;;  %v7241_v53 = vpop.f32.mrb[19].mxu1 }
 0x5e8   : > { %7390 = vst.msk [vmem:[%s12301_s21 + $0x80] sm:$0xff] %vm3777_vm2, %v7358_v48  ;;  %v9812_v58 = vadd.f32 %v12294_v2, %v7241_v53 }
 0x5e9   : > { %v7361_v59 = vmax.f32 %v9811_v51, 0.0 }
 0x5ea   : > { %v7360_v18 = vmax.f32 %v9812_v58, 0.0  ;;  %v9745_v19 = vpop.f32.mrb[20].mxu1 }
 0x5eb   : > { %7393 = vst.msk [vmem:[%s12301_s21 + $0x98] sm:$0xff] %vm3777_vm2, %v7361_v59  ;;  %v9813_v35 = vadd.f32 %v9745_v19, %v12294_v2  ;;  %v7251_v5 = vpop.f32.mrb[21].mxu1 }
 0x5ec   : > { %7392 = vst.msk [vmem:[%s12301_s21 + $0x90] sm:$0xff] %vm3777_vm2, %v7360_v18  ;;  %v9814_v63 = vadd.f32 %v12294_v2, %v7251_v5 }
 0x5ed   : > { %v7363_v62 = vmax.f32 %v9813_v35, 0.0 }
 0x5ee   : > { %v7362_v36 = vmax.f32 %v9814_v63, 0.0  ;;  %v9748_v38 = vpop.f32.mrb[22].mxu1 }
 0x5ef   : > { %7395 = vst.msk [vmem:[%s12301_s21 + $0xa8] sm:$0xff] %vm3777_vm2, %v7363_v62  ;;  %v9815_v4 = vadd.f32 %v9748_v38, %v12294_v2  ;;  %v7261_v6 = vpop.f32.mrb[23].mxu1 }
 0x5f0   : > { %7394 = vst.msk [vmem:[%s12301_s21 + $0xa0] sm:$0xff] %vm3777_vm2, %v7362_v36  ;;  %v9816_v39 = vadd.f32 %v12294_v2, %v7261_v6 }
 0x5f1   : > { %v7365_v3 = vmax.f32 %v9815_v4, 0.0 }
 0x5f2   : > { %v7364_v0 = vmax.f32 %v9816_v39, 0.0  ;;  %v9751_v37 = vpop.f32.mrb[24].mxu1 }
 0x5f3   : > { %7397 = vst.msk [vmem:[%s12301_s21 + $0xb8] sm:$0xff] %vm3777_vm2, %v7365_v3  ;;  %v9817_v1 = vadd.f32 %v9751_v37, %v12294_v2  ;;  %v7271_v7 = vpop.f32.mrb[25].mxu1 }
 0x5f4   : > { %7396 = vst.msk [vmem:[%s12301_s21 + $0xb0] sm:$0xff] %vm3777_vm2, %v7364_v0  ;;  %v9818_v8 = vadd.f32 %v12294_v2, %v7271_v7 }
 0x5f5   : > { %v7367_v9 = vmax.f32 %v9817_v1, 0.0 }
 0x5f6   : > { %v7366_v10 = vmax.f32 %v9818_v8, 0.0  ;;  %v9754_v11 = vpop.f32.mrb[26].mxu1 }
 0x5f7   : > { %7399 = vst.msk [vmem:[%s12301_s21 + $0xc8] sm:$0xff] %vm3777_vm2, %v7367_v9  ;;  %v9819_v12 = vadd.f32 %v9754_v11, %v12294_v2  ;;  %v7281_v13 = vpop.f32.mrb[27].mxu1 }
 0x5f8   : > { %7398 = vst.msk [vmem:[%s12301_s21 + $0xc0] sm:$0xff] %vm3777_vm2, %v7366_v10  ;;  %v9820_v14 = vadd.f32 %v12294_v2, %v7281_v13 }
 0x5f9   : > { %v7369_v15 = vmax.f32 %v9819_v12, 0.0 }
 0x5fa   : > { %v7368_v16 = vmax.f32 %v9820_v14, 0.0  ;;  %v9757_v49 = vpop.f32.mrb[28].mxu1 }
 0x5fb   : > { %7401 = vst.msk [vmem:[%s12301_s21 + $0xd8] sm:$0xff] %vm3777_vm2, %v7369_v15  ;;  %v9821_v17 = vadd.f32 %v9757_v49, %v12294_v2  ;;  %v7291_v52 = vpop.f32.mrb[29].mxu1 }
 0x5fc   : > { %7400 = vst.msk [vmem:[%s12301_s21 + $0xd0] sm:$0xff] %vm3777_vm2, %v7368_v16  ;;  %v9822_v55 = vadd.f32 %v12294_v2, %v7291_v52 }
 0x5fd   : > { %v7371_v54 = vmax.f32 %v9821_v17, 0.0 }
 0x5fe   : > { %v7370_v61 = vmax.f32 %v9822_v55, 0.0  ;;  %v9760_v56 = vpop.f32.mrb[30].mxu1 }
 0x5ff   : > { %7403 = vst.msk [vmem:[%s12301_s21 + $0xe8] sm:$0xff] %vm3777_vm2, %v7371_v54  ;;  %v9823_v57 = vadd.f32 %v9760_v56, %v12294_v2  ;;  %v7301_v20 = vpop.f32.mrb[31].mxu1 }
 0x600   : > { %7402 = vst.msk [vmem:[%s12301_s21 + $0xe0] sm:$0xff] %vm3777_vm2, %v7370_v61  ;;  %v9824_v21 = vadd.f32 %v12294_v2, %v7301_v20 }
 0x601   : > { %v7373_v60 = vmax.f32 %v9823_v57, 0.0 }
 0x602   : > { %v7372_v22 = vmax.f32 %v9824_v21, 0.0 }
 0x603   : > { %7405 = vst.msk [vmem:[%s12301_s21 + $0xf8] sm:$0xff] %vm3777_vm2, %v7373_v60 }
 0x604   : > { %7404 = vst.msk [vmem:[%s12301_s21 + $0xf0] sm:$0xff] %vm3777_vm2, %v7372_v22 }
 0x605 PF: > { %s15_s18 = sadd.s32 1, %s10353_s18  }
 0x606   : > { %p12_p4 = scmp.ge.s32.totalorder %s15_s18, 4  }
 0x608   :  { %14 = sbr.rel (!%p12_p4) target bundleno = 1 (0x1), region = 90 }

</bundles_post_ra>
